<compile_context>
chip_gen: v6e
topology: v6e:2x2x1
jax: 0.10.0
libtpu: 0.0.40
codegen_flags: <defaults>
</compile_context>

<pallas_src>
import jax
import jax.numpy as jnp
from jax.experimental import pallas as pl
from jax.experimental.pallas import tpu as pltpu

_LN_EPS = 1e-5            # torch.nn.LayerNorm default eps
_ATTN_EPS = 1e-6          # denominator eps in EfficientAttention
_SQRT_2_OVER_PI = 0.7978845608028654
_LANE = 128


def _round_up(x, m):
    return ((x + m - 1) // m) * m


def _gelu_tanh(x):
    # tanh-approx GELU: transcendental goes to the EUP slot; ~4e-4 off exact GELU.
    return 0.5 * x * (1.0 + jnp.tanh(_SQRT_2_OVER_PI * (x + 0.044715 * x * x * x)))


def _make_kernel(c_true, hc, nc):
    """Build the fused block kernel with static (trace-time) config baked in."""
    inv_c = 1.0 / float(c_true)

    def kernel(x_ref, cmask_ref, n1w_ref, n1b_ref, wattn_ref, maskkv_ref,
               fsum_ref, hmask_ref, projw_ref, projb_ref, convw_ref, convb_ref,
               n2w_ref, n2b_ref, wfg_ref, bfg_ref, w2_ref, b2_ref, o_ref):
        Bt, N, Cp = x_ref.shape
        R = Bt * N
        HFp = maskkv_ref.shape[0]
        bf16 = jnp.bfloat16

        cmask = cmask_ref[...]                       # (1, Cp): 1.0 on real channels

        def layernorm(t, w, b):
            # Padded channel lanes of `t` are zero, so sum * 1/C_true is the true
            # mean; cmask re-zeroes the padded lanes after centering so the
            # variance and the output stay exact (w, b are zero-padded).
            mu = jnp.sum(t, axis=-1, keepdims=True) * inv_c
            xc = (t - mu) * cmask
            var = jnp.sum(xc * xc, axis=-1, keepdims=True) * inv_c
            return xc * jax.lax.rsqrt(var + _LN_EPS) * w + b

        x = x_ref[...].reshape(R, Cp)                # flatten the batch tile

        # ---------- attention branch: x + proj(linear_attn(LN1(x))) ----------
        xn = layernorm(x, n1w_ref[...], n1b_ref[...])
        # one fused matmul [Wq@R_blk | Wk@R_blk | Wv]; keep the result in bf16 —
        # it only feeds bf16 MXU contractions, and this halves the biggest temp.
        t = jnp.dot(xn.astype(bf16), wattn_ref[...],
                    preferred_element_type=jnp.float32).astype(bf16)
        qp = jnp.maximum(t[:, :HFp], 0.0)            # ReLU feature maps (bf16)
        kp = jnp.maximum(t[:, HFp:2 * HFp], 0.0)
        v = t[:, 2 * HFp:]                           # (R, Cp) bf16

        qp3 = qp.reshape(Bt, N, HFp)
        kp3 = kp.reshape(Bt, N, HFp)
        v3 = v.reshape(Bt, N, Cp)

        # kv / ksum are per batch element -> batched contractions over seq.
        kv = jnp.einsum('bnf,bnc->bfc', kp3, v3,
                        preferred_element_type=jnp.float32)       # (Bt, HFp, Cp)
        kv = kv * maskkv_ref[...]                    # keep the per-head blocks only
        num = jnp.einsum('bnf,bfc->bnc', qp3, kv.astype(bf16),
                         preferred_element_type=jnp.float32).reshape(R, Cp)

        # Denominator kept in f32 (ksum grows with N; bf16 would cost ~1% rel err).
        # Per-head reduce via a (HFp, H) 0/1 matmul, then broadcast over the d
        # lanes of each head via an (H, Cp) 0/1 matmul — F x fewer MXU flops than
        # the previous (R, HF) @ (HF, C) broadcast.
        ksum = jnp.sum(kp3.astype(jnp.float32), axis=1, keepdims=True)
        qk = (qp3.astype(jnp.float32) * ksum).reshape(R, HFp)
        den_h = jnp.dot(qk, fsum_ref[...], preferred_element_type=jnp.float32)
        den = jnp.dot(den_h, hmask_ref[...], preferred_element_type=jnp.float32)
        attn = num * pl.reciprocal(den + _ATTN_EPS, approx=True)

        attn = jnp.dot(attn.astype(bf16), projw_ref[...],
                       preferred_element_type=jnp.float32) + projb_ref[...]
        x1 = x + attn

        # ---- depthwise Conv1d(kernel=3, pad=1, groups=C) over the seq axis ----
        # shifts via XLU roll on the flattened row axis; iota masks re-zero rows
        # at batch boundaries so batch elements never leak into each other.
        cw = convw_ref[...]                          # (3, Cp)
        pos = jax.lax.broadcasted_iota(jnp.int32, (R, 1), 0) % N
        x_prev = jnp.where(pos == 0, 0.0, pltpu.roll(x1, 1, axis=0))
        x_next = jnp.where(pos == N - 1, 0.0, pltpu.roll(x1, R - 1, axis=0))
        xc = x_prev * cw[0:1] + x1 * cw[1:2] + x_next * cw[2:3] + convb_ref[...]

        # ------ MLP branch: x1 + AdaptiveMLP(LN2(x1 + conv)), Hd-chunked ------
        y = layernorm(x1 + xc, n2w_ref[...], n2b_ref[...]).astype(bf16)
        m = jnp.zeros((R, Cp), jnp.float32)
        for c in range(nc):                          # static; nc = Hdp/hc is small
            c0 = c * 2 * hc
            hg = jnp.dot(y, wfg_ref[:, c0:c0 + 2 * hc],
                         preferred_element_type=jnp.float32) + bfg_ref[:, c0:c0 + 2 * hc]
            h1 = hg[:, :hc]
            gate = jax.nn.sigmoid(hg[:, hc:])
            a = _gelu_tanh(h1) * gate
            m = m + jnp.dot(a.astype(bf16), w2_ref[c * hc:(c + 1) * hc, :],
                            preferred_element_type=jnp.float32)
        m = m + b2_ref[...]

        o_ref[...] = (x1 + m).reshape(Bt, N, Cp)     # Cp is 128-aligned: dense vst

    return kernel


def msfaet_block(x, params, *, num_heads, batch_tile=None):
    B, N, C = x.shape
    H = num_heads
    assert C % H == 0
    d = C // H
    rf = params["rf"]                                # (H, d, F)
    F = rf.shape[-1]
    HF = H * F
    Hd = params["fc1_w"].shape[1]

    Cp = _round_up(C, _LANE)
    HFp = _round_up(HF, _LANE)
    Hdp = _round_up(Hd, _LANE)
    Hp = _round_up(H, 8)

    # ---------------- generation-aware VMEM budget / tile sizing ----------------
    try:
        vmem_cap = int(pltpu.get_tpu_info().vmem_capacity_bytes)
    except Exception:                                # conservative (v7x-sized) default
        vmem_cap = 64 * 1024 * 1024
    vmem_limit = max(32 << 20, (vmem_cap * 3) // 4)  # ~48 MiB on v7x, ~96 MiB on v5e/v6e
    budget = int(vmem_limit * 0.8)                   # leave headroom for compiler scratch

    def pick_hc(bt):                                 # MLP hidden-chunk width (x128)
        r = bt * N
        units = Hdp // _LANE
        for ncand in range(1, units + 1):
            if units % ncand == 0 and r * 2 * (Hdp // ncand) * 4 <= (8 << 20):
                return Hdp // ncand
        return _LANE

    def est_bytes(bt, hcw):                          # rough per-grid-step VMEM estimate
        r = bt * N
        io = 4 * bt * N * Cp * 4                     # in + out tiles, double-buffered
        w = 2 * (2 * (Cp * (2 * HFp + Cp) + HFp * Cp + Cp * Cp
                      + 2 * Cp * Hdp + Hdp * Cp)     # bf16 weights
                 + 4 * (HFp * Hp + Hp * Cp + 16 * Cp + 4 * Hdp))   # f32 masks/biases
        tmp = (r * (2 * HFp + Cp) * 2                # t (bf16)
               + r * HFp * 4                         # qk (f32)
               + bt * HFp * Cp * 4                   # kv (f32)
               + 6 * r * Cp * 4                      # x / xn / x1 / num / den / m
               + r * 3 * hcw * 4)                    # hg chunk + a chunk
        return io + w + tmp

    if batch_tile is None:
        # cap so the 'parallel' grid axis has >=2 steps (feeds both v7x TCs)
        bt_cap = B if B <= 1 else max(1, (B + 1) // 2)
        Bt = 1
        for cand in range(bt_cap, 0, -1):
            if est_bytes(cand, pick_hc(cand)) <= budget:
                Bt = cand
                break
    else:
        Bt = max(1, min(batch_tile, B))
    hc = pick_hc(Bt)
    nc = Hdp // hc

    Bpad = _round_up(B, Bt)                          # pad batch instead of shrinking Bt

    # ------------ wrapper-side weight preprocessing (plain JAX, once) ------------
    f32 = jnp.float32

    def pad2(a, r, c):
        return jnp.pad(a.astype(f32), ((0, r - a.shape[0]), (0, c - a.shape[1])))

    # Block-diagonal random-feature matrix, the kv head mask, and the two small
    # 0/1 matrices used for the per-head denominator reduce / broadcast.
    r_blk = jnp.zeros((C, HF), f32)
    mask_kv = jnp.zeros((HF, C), f32)
    fsum = jnp.zeros((HF, H), f32)
    hmask = jnp.zeros((H, C), f32)
    for h in range(H):
        r_blk = r_blk.at[h * d:(h + 1) * d, h * F:(h + 1) * F].set(rf[h])
        mask_kv = mask_kv.at[h * F:(h + 1) * F, h * d:(h + 1) * d].set(1.0)
        fsum = fsum.at[h * F:(h + 1) * F, h].set(1.0)
        hmask = hmask.at[h, h * d:(h + 1) * d].set(1.0)

    wq = params["qkv_w"][:, :C]
    wk = params["qkv_w"][:, C:2 * C]
    wv = params["qkv_w"][:, 2 * C:]
    # lane-pad each segment to a 128 multiple so the in-kernel slices of `t` land
    # on vreg tile boundaries, then pad the input (row) dim to Cp.
    w_attn = jnp.concatenate([pad2(wq @ r_blk, C, HFp),
                              pad2(wk @ r_blk, C, HFp),
                              pad2(wv, C, Cp)], axis=1)
    w_attn = jnp.pad(w_attn, ((0, Cp - C), (0, 0)))  # (Cp, 2*HFp + Cp)

    # MLP weights: interleave [fc1 | gate] per Hd-chunk so each chunk is a single
    # contiguous, 128-aligned column block of w_fg.
    fc1_w = pad2(params["fc1_w"], Cp, Hdp)
    gate_w = pad2(params["gate_w"], Cp, Hdp)
    fc1_b = pad2(params["fc1_b"], 1, Hdp)
    gate_b = pad2(params["gate_b"], 1, Hdp)
    wfg_parts, bfg_parts = [], []
    for c in range(nc):
        sl = slice(c * hc, (c + 1) * hc)
        wfg_parts += [fc1_w[:, sl], gate_w[:, sl]]
        bfg_parts += [fc1_b[:, sl], gate_b[:, sl]]
    w_fg = jnp.concatenate(wfg_parts, axis=1)        # (Cp, 2*Hdp)
    b_fg = jnp.concatenate(bfg_parts, axis=1)        # (1, 2*Hdp)

    cmask = (jnp.arange(Cp) < C).astype(f32)[None, :]

    bf16 = jnp.bfloat16
    operands = (
        jnp.pad(x.astype(f32), ((0, Bpad - B), (0, 0), (0, Cp - C))),
        cmask,
        pad2(params["n1_w"], 1, Cp), pad2(params["n1_b"], 1, Cp),
        w_attn.astype(bf16), pad2(mask_kv, HFp, Cp).astype(bf16),
        pad2(fsum, HFp, Hp), pad2(hmask, Hp, Cp),
        pad2(params["proj_w"], Cp, Cp).astype(bf16), pad2(params["proj_b"], 1, Cp),
        pad2(params["conv_w"], 3, Cp), pad2(params["conv_b"], 1, Cp),
        pad2(params["n2_w"], 1, Cp), pad2(params["n2_b"], 1, Cp),
        w_fg.astype(bf16), b_fg,
        pad2(params["fc2_w"], Hdp, Cp).astype(bf16), pad2(params["fc2_b"], 1, Cp),
    )

    def rep(a):  # weight/bias: full array, constant block index (stays resident)
        zeros = (0,) * a.ndim
        return pl.BlockSpec(a.shape, lambda b, _z=zeros: _z)

    in_specs = [pl.BlockSpec((Bt, N, Cp), lambda b: (b, 0, 0))]
    in_specs += [rep(a) for a in operands[1:]]

    # TODO(synk): for very long sequences add a second "arbitrary" N-chunk grid
    # axis with two-phase attention (accumulate kv/ksum, then num/den + conv + MLP).
    # TODO(synk): on v5e with F, d >= 128 switch the block-diagonal kv/num
    # contractions to per-head batched dot_general to avoid H x redundant MXU flops.
    out = pl.pallas_call(
        _make_kernel(C, hc, nc),
        out_shape=jax.ShapeDtypeStruct((Bpad, N, Cp), jnp.float32),
        grid=(Bpad // Bt,),
        in_specs=in_specs,
        out_specs=pl.BlockSpec((Bt, N, Cp), lambda b: (b, 0, 0)),
        compiler_params=pltpu.CompilerParams(
            dimension_semantics=("parallel",),       # batch tiles shard across TCs
            vmem_limit_bytes=int(vmem_limit),
        ),
    )(*operands)
    return out[:B, :, :C].astype(x.dtype)


def init_params(key, dim, num_heads, mlp_ratio=4.0):
    d = dim // num_heads
    F = max(32, dim // 4)                 # nb_features
    Hd = int(dim * mlp_ratio)             # mlp hidden dim
    keys = jax.random.split(key, 12)
    scale = 0.05

    def nrm(k, shape, s=scale):
        return (s * jax.random.normal(k, shape)).astype(jnp.float32)

    return {
        "n1_w": jnp.ones((1, dim), jnp.float32),
        "n1_b": jnp.zeros((1, dim), jnp.float32),
        "qkv_w": nrm(keys[0], (dim, 3 * dim)),          # stored as (in, out)
        "rf": jax.random.normal(keys[1], (num_heads, d, F), jnp.float32),
        "proj_w": nrm(keys[2], (dim, dim)),
        "proj_b": nrm(keys[3], (1, dim)),
        "conv_w": nrm(keys[4], (3, dim)),               # (tap, channel)
        "conv_b": nrm(keys[5], (1, dim)),
        "n2_w": jnp.ones((1, dim), jnp.float32),
        "n2_b": jnp.zeros((1, dim), jnp.float32),
        "fc1_w": nrm(keys[6], (dim, Hd)),
        "fc1_b": nrm(keys[7], (1, Hd)),
        "gate_w": nrm(keys[8], (dim, Hd)),
        "gate_b": nrm(keys[9], (1, Hd)),
        "fc2_w": nrm(keys[10], (Hd, dim)),
        "fc2_b": nrm(keys[11], (1, dim)),
    }


def reference(x, params, num_heads):
    """Pure-JAX f32 reference mirroring the PyTorch forward (dropout=0, eval)."""
    B, N, C = x.shape
    d = C // num_heads

    def ln(t, w, b):
        mu = t.mean(-1, keepdims=True)
        var = ((t - mu) ** 2).mean(-1, keepdims=True)
        return (t - mu) / jnp.sqrt(var + _LN_EPS) * w + b

    xn = ln(x, params["n1_w"][0], params["n1_b"][0])
    qkv = xn @ params["qkv_w"]
    q, k, v = qkv[..., :C], qkv[..., C:2 * C], qkv[..., 2 * C:]

    def heads(t):
        return t.reshape(B, N, num_heads, d).transpose(0, 2, 1, 3)

    q, k, v = heads(q), heads(k), heads(v)
    qp = jax.nn.relu(jnp.einsum('bhnd,hdf->bhnf', q, params["rf"]))
    kp = jax.nn.relu(jnp.einsum('bhnd,hdf->bhnf', k, params["rf"]))
    kv = jnp.einsum('bhnf,bhnd->bhfd', kp, v)
    num = jnp.einsum('bhnf,bhfd->bhnd', qp, kv)
    z = jnp.einsum('bhnf,bhf->bhn', qp, kp.sum(2))[..., None]
    attn = (num / (z + _ATTN_EPS)).transpose(0, 2, 1, 3).reshape(B, N, C)
    attn = attn @ params["proj_w"] + params["proj_b"][0]
    x1 = x + attn

    zero = jnp.zeros((B, 1, C), x.dtype)
    xprev = jnp.concatenate([zero, x1[:, :-1]], 1)
    xnext = jnp.concatenate([x1[:, 1:], zero], 1)
    cw = params["conv_w"]
    xc = xprev * cw[0] + x1 * cw[1] + xnext * cw[2] + params["conv_b"][0]

    y = ln(x1 + xc, params["n2_w"][0], params["n2_b"][0])
    h1 = y @ params["fc1_w"] + params["fc1_b"][0]
    g = jax.nn.sigmoid(y @ params["gate_w"] + params["gate_b"][0])
    a = jax.nn.gelu(h1, approximate=False) * g
    m = a @ params["fc2_w"] + params["fc2_b"][0]
    return x1 + m


if __name__ == "__main__":
    # small shapes: batch=4, seq=8, dim=32, heads=4; auto tiling -> Bt=2, grid=(2,)
    B, N, dim, num_heads = 4, 8, 32, 4
    key = jax.random.PRNGKey(0)
    kx, kparam = jax.random.split(key)
    x = jax.random.normal(kx, (B, N, dim), dtype=jnp.float32)
    params = init_params(kparam, dim, num_heads)

    out = msfaet_block(x, params, num_heads=num_heads)
    out = jax.block_until_ready(out)

    ref = reference(x, params, num_heads)
    err = float(jnp.max(jnp.abs(out - ref)))
    # tolerance covers bf16 MXU operands, tanh-approx GELU and approx reciprocal
    if not (err < 2e-2):
        raise AssertionError(f"Pallas kernel mismatch vs reference: max abs err {err}")
    print("KERNEL_OK")
</pallas_src>

<mosaic_0001>
module attributes {stable_mosaic.version = 11 : i64} {
  func.func @kernel(%arg0: i32, %arg1: memref<2x8x128xf32, #tpu.memory_space<vmem>>, %arg2: memref<1x128xf32, #tpu.memory_space<vmem>>, %arg3: memref<1x128xf32, #tpu.memory_space<vmem>>, %arg4: memref<1x128xf32, #tpu.memory_space<vmem>>, %arg5: memref<128x384xbf16, #tpu.memory_space<vmem>>, %arg6: memref<128x128xbf16, #tpu.memory_space<vmem>>, %arg7: memref<128x8xf32, #tpu.memory_space<vmem>>, %arg8: memref<8x128xf32, #tpu.memory_space<vmem>>, %arg9: memref<128x128xbf16, #tpu.memory_space<vmem>>, %arg10: memref<1x128xf32, #tpu.memory_space<vmem>>, %arg11: memref<3x128xf32, #tpu.memory_space<vmem>>, %arg12: memref<1x128xf32, #tpu.memory_space<vmem>>, %arg13: memref<1x128xf32, #tpu.memory_space<vmem>>, %arg14: memref<1x128xf32, #tpu.memory_space<vmem>>, %arg15: memref<128x256xbf16, #tpu.memory_space<vmem>>, %arg16: memref<1x256xf32, #tpu.memory_space<vmem>>, %arg17: memref<128x128xbf16, #tpu.memory_space<vmem>>, %arg18: memref<1x128xf32, #tpu.memory_space<vmem>>, %arg19: memref<2x8x128xf32, #tpu.memory_space<vmem>>) attributes {dimension_semantics = [#tpu.dimension_semantics<parallel>], iteration_bounds = array<i64: 2>, scalar_prefetch = 0 : i64, scratch_operands = 0 : i64, tpu.core_type = #tpu.core_type<tc>, window_params = [{transform_indices = @transform_0, window_bounds = array<i64: 2, 8, 128>}, {pipeline_mode = #tpu.pipeline_mode<synchronous>, transform_indices = @transform_1, window_bounds = array<i64: 1, 128>}, {pipeline_mode = #tpu.pipeline_mode<synchronous>, transform_indices = @transform_2, window_bounds = array<i64: 1, 128>}, {pipeline_mode = #tpu.pipeline_mode<synchronous>, transform_indices = @transform_3, window_bounds = array<i64: 1, 128>}, {pipeline_mode = #tpu.pipeline_mode<synchronous>, transform_indices = @transform_4, window_bounds = array<i64: 128, 384>}, {pipeline_mode = #tpu.pipeline_mode<synchronous>, transform_indices = @transform_5, window_bounds = array<i64: 128, 128>}, {pipeline_mode = #tpu.pipeline_mode<synchronous>, transform_indices = @transform_6, window_bounds = array<i64: 128, 8>}, {pipeline_mode = #tpu.pipeline_mode<synchronous>, transform_indices = @transform_7, window_bounds = array<i64: 8, 128>}, {pipeline_mode = #tpu.pipeline_mode<synchronous>, transform_indices = @transform_8, window_bounds = array<i64: 128, 128>}, {pipeline_mode = #tpu.pipeline_mode<synchronous>, transform_indices = @transform_9, window_bounds = array<i64: 1, 128>}, {pipeline_mode = #tpu.pipeline_mode<synchronous>, transform_indices = @transform_10, window_bounds = array<i64: 3, 128>}, {pipeline_mode = #tpu.pipeline_mode<synchronous>, transform_indices = @transform_11, window_bounds = array<i64: 1, 128>}, {pipeline_mode = #tpu.pipeline_mode<synchronous>, transform_indices = @transform_12, window_bounds = array<i64: 1, 128>}, {pipeline_mode = #tpu.pipeline_mode<synchronous>, transform_indices = @transform_13, window_bounds = array<i64: 1, 128>}, {pipeline_mode = #tpu.pipeline_mode<synchronous>, transform_indices = @transform_14, window_bounds = array<i64: 128, 256>}, {pipeline_mode = #tpu.pipeline_mode<synchronous>, transform_indices = @transform_15, window_bounds = array<i64: 1, 256>}, {pipeline_mode = #tpu.pipeline_mode<synchronous>, transform_indices = @transform_16, window_bounds = array<i64: 128, 128>}, {pipeline_mode = #tpu.pipeline_mode<synchronous>, transform_indices = @transform_17, window_bounds = array<i64: 1, 128>}, {transform_indices = @transform_18, window_bounds = array<i64: 2, 8, 128>}]} {
    %c0 = arith.constant 0 : index
    %c0_0 = arith.constant 0 : index
    %0 = vector.load %arg2[%c0, %c0_0] : memref<1x128xf32, #tpu.memory_space<vmem>>, vector<1x128xf32>
    %c0_1 = arith.constant 0 : index
    %c0_2 = arith.constant 0 : index
    %c0_3 = arith.constant 0 : index
    %1 = vector.load %arg1[%c0_1, %c0_2, %c0_3] : memref<2x8x128xf32, #tpu.memory_space<vmem>>, vector<2x8x128xf32>
    %2 = vector.shape_cast %1 : vector<2x8x128xf32> to vector<16x128xf32>
    %c0_4 = arith.constant 0 : index
    %c0_5 = arith.constant 0 : index
    %3 = vector.load %arg3[%c0_4, %c0_5] : memref<1x128xf32, #tpu.memory_space<vmem>>, vector<1x128xf32>
    %c0_6 = arith.constant 0 : index
    %c0_7 = arith.constant 0 : index
    %4 = vector.load %arg4[%c0_6, %c0_7] : memref<1x128xf32, #tpu.memory_space<vmem>>, vector<1x128xf32>
    %cst = arith.constant dense<0.000000e+00> : vector<16xf32>
    %5 = vector.multi_reduction <add>, %2, %cst [1] : vector<16x128xf32> to vector<16xf32>
    %6 = vector.shape_cast %5 : vector<16xf32> to vector<16x1xf32>
    %cst_8 = arith.constant 3.125000e-02 : f32
    %7 = vector.broadcast %cst_8 : f32 to vector<16x1xf32>
    %8 = arith.mulf %6, %7 : vector<16x1xf32>
    %9 = vector.broadcast %8 : vector<16x1xf32> to vector<16x128xf32>
    %10 = arith.subf %2, %9 : vector<16x128xf32>
    %11 = vector.broadcast %0 : vector<1x128xf32> to vector<16x128xf32>
    %12 = arith.mulf %10, %11 : vector<16x128xf32>
    %13 = arith.mulf %12, %12 : vector<16x128xf32>
    %cst_9 = arith.constant dense<0.000000e+00> : vector<16xf32>
    %14 = vector.multi_reduction <add>, %13, %cst_9 [1] : vector<16x128xf32> to vector<16xf32>
    %15 = vector.shape_cast %14 : vector<16xf32> to vector<16x1xf32>
    %cst_10 = arith.constant 3.125000e-02 : f32
    %16 = vector.broadcast %cst_10 : f32 to vector<16x1xf32>
    %17 = arith.mulf %15, %16 : vector<16x1xf32>
    %cst_11 = arith.constant 9.99999974E-6 : f32
    %18 = vector.broadcast %cst_11 : f32 to vector<16x1xf32>
    %19 = arith.addf %17, %18 : vector<16x1xf32>
    %20 = math.rsqrt %19 : vector<16x1xf32>
    %21 = vector.broadcast %20 : vector<16x1xf32> to vector<16x128xf32>
    %22 = arith.mulf %12, %21 : vector<16x128xf32>
    %23 = vector.broadcast %3 : vector<1x128xf32> to vector<16x128xf32>
    %24 = arith.mulf %22, %23 : vector<16x128xf32>
    %25 = vector.broadcast %4 : vector<1x128xf32> to vector<16x128xf32>
    %26 = arith.addf %24, %25 : vector<16x128xf32>
    %27 = arith.truncf %26 : vector<16x128xf32> to vector<16x128xbf16>
    %c0_12 = arith.constant 0 : index
    %c0_13 = arith.constant 0 : index
    %28 = vector.load %arg5[%c0_12, %c0_13] : memref<128x384xbf16, #tpu.memory_space<vmem>>, vector<128x384xbf16>
    %cst_14 = arith.constant dense<0.000000e+00> : vector<16x384xf32>
    %29 = tpu.matmul %27, %28, %cst_14 {dimension_numbers = #tpu.dot_dimension_numbers<[1], [0], [0], [1], [0, 0, 1, 1], [], []>} : vector<16x128xbf16>, vector<128x384xbf16>, vector<16x384xf32> -> vector<16x384xf32>
    %30 = arith.truncf %29 : vector<16x384xf32> to vector<16x384xbf16>
    %31 = vector.extract_strided_slice %30 {offsets = [0, 0], sizes = [16, 128], strides = [1, 1]} : vector<16x384xbf16> to vector<16x128xbf16>
    %cst_15 = arith.constant 0.000000e+00 : bf16
    %32 = vector.broadcast %cst_15 : bf16 to vector<16x128xbf16>
    %33 = arith.maximumf %31, %32 : vector<16x128xbf16>
    %34 = vector.extract_strided_slice %30 {offsets = [0, 128], sizes = [16, 128], strides = [1, 1]} : vector<16x384xbf16> to vector<16x128xbf16>
    %cst_16 = arith.constant 0.000000e+00 : bf16
    %35 = vector.broadcast %cst_16 : bf16 to vector<16x128xbf16>
    %36 = arith.maximumf %34, %35 : vector<16x128xbf16>
    %37 = vector.extract_strided_slice %30 {offsets = [0, 256], sizes = [16, 128], strides = [1, 1]} : vector<16x384xbf16> to vector<16x128xbf16>
    %38 = vector.shape_cast %33 : vector<16x128xbf16> to vector<2x8x128xbf16>
    %39 = vector.shape_cast %36 : vector<16x128xbf16> to vector<2x8x128xbf16>
    %40 = vector.shape_cast %37 : vector<16x128xbf16> to vector<2x8x128xbf16>
    "tpu.trace_start"() <{level = 10 : i32, message = "bnf,bnc->bfc"}> : () -> ()
    %cst_17 = arith.constant dense<0.000000e+00> : vector<2x128x128xf32>
    %41 = tpu.matmul %39, %40, %cst_17 {dimension_numbers = #tpu.dot_dimension_numbers<[1], [1], [2], [2], [0, 0, 0, 2, 1, 2], [0], [0]>} : vector<2x8x128xbf16>, vector<2x8x128xbf16>, vector<2x128x128xf32> -> vector<2x128x128xf32>
    "tpu.trace_stop"() : () -> ()
    %c0_18 = arith.constant 0 : index
    %c0_19 = arith.constant 0 : index
    %42 = vector.load %arg6[%c0_18, %c0_19] : memref<128x128xbf16, #tpu.memory_space<vmem>>, vector<128x128xbf16>
    %43 = arith.extf %42 : vector<128x128xbf16> to vector<128x128xf32>
    %44 = vector.shape_cast %43 : vector<128x128xf32> to vector<1x128x128xf32>
    %45 = vector.broadcast %44 : vector<1x128x128xf32> to vector<2x128x128xf32>
    %46 = arith.mulf %41, %45 : vector<2x128x128xf32>
    %47 = arith.truncf %46 : vector<2x128x128xf32> to vector<2x128x128xbf16>
    "tpu.trace_start"() <{level = 10 : i32, message = "bnf,bfc->bnc"}> : () -> ()
    %cst_20 = arith.constant dense<0.000000e+00> : vector<2x8x128xf32>
    %48 = tpu.matmul %38, %47, %cst_20 {dimension_numbers = #tpu.dot_dimension_numbers<[2], [1], [1], [2], [0, 0, 0, 1, 1, 2], [0], [0]>} : vector<2x8x128xbf16>, vector<2x128x128xbf16>, vector<2x8x128xf32> -> vector<2x8x128xf32>
    "tpu.trace_stop"() : () -> ()
    %49 = vector.shape_cast %48 : vector<2x8x128xf32> to vector<16x128xf32>
    %50 = arith.extf %39 : vector<2x8x128xbf16> to vector<2x8x128xf32>
    %cst_21 = arith.constant dense<0.000000e+00> : vector<2x128xf32>
    %51 = vector.multi_reduction <add>, %50, %cst_21 [1] : vector<2x8x128xf32> to vector<2x128xf32>
    %52 = vector.shape_cast %51 : vector<2x128xf32> to vector<2x1x128xf32>
    %53 = arith.extf %38 : vector<2x8x128xbf16> to vector<2x8x128xf32>
    %54 = vector.broadcast %52 : vector<2x1x128xf32> to vector<2x8x128xf32>
    %55 = arith.mulf %53, %54 : vector<2x8x128xf32>
    %56 = vector.shape_cast %55 : vector<2x8x128xf32> to vector<16x128xf32>
    %c0_22 = arith.constant 0 : index
    %c0_23 = arith.constant 0 : index
    %57 = vector.load %arg7[%c0_22, %c0_23] : memref<128x8xf32, #tpu.memory_space<vmem>>, vector<128x8xf32>
    %cst_24 = arith.constant dense<0.000000e+00> : vector<16x8xf32>
    %58 = tpu.matmul %56, %57, %cst_24 {dimension_numbers = #tpu.dot_dimension_numbers<[1], [0], [0], [1], [0, 0, 1, 1], [], []>} : vector<16x128xf32>, vector<128x8xf32>, vector<16x8xf32> -> vector<16x8xf32>
    %c0_25 = arith.constant 0 : index
    %c0_26 = arith.constant 0 : index
    %59 = vector.load %arg8[%c0_25, %c0_26] : memref<8x128xf32, #tpu.memory_space<vmem>>, vector<8x128xf32>
    %cst_27 = arith.constant dense<0.000000e+00> : vector<16x128xf32>
    %60 = tpu.matmul %58, %59, %cst_27 {dimension_numbers = #tpu.dot_dimension_numbers<[1], [0], [0], [1], [0, 0, 1, 1], [], []>} : vector<16x8xf32>, vector<8x128xf32>, vector<16x128xf32> -> vector<16x128xf32>
    %cst_28 = arith.constant 9.99999997E-7 : f32
    %61 = vector.broadcast %cst_28 : f32 to vector<16x128xf32>
    %62 = arith.addf %60, %61 : vector<16x128xf32>
    %63 = tpu.reciprocal %62 {approx = true} : vector<16x128xf32> -> vector<16x128xf32>
    %64 = arith.mulf %49, %63 : vector<16x128xf32>
    %65 = arith.truncf %64 : vector<16x128xf32> to vector<16x128xbf16>
    %c0_29 = arith.constant 0 : index
    %c0_30 = arith.constant 0 : index
    %66 = vector.load %arg9[%c0_29, %c0_30] : memref<128x128xbf16, #tpu.memory_space<vmem>>, vector<128x128xbf16>
    %cst_31 = arith.constant dense<0.000000e+00> : vector<16x128xf32>
    %67 = tpu.matmul %65, %66, %cst_31 {dimension_numbers = #tpu.dot_dimension_numbers<[1], [0], [0], [1], [0, 0, 1, 1], [], []>} : vector<16x128xbf16>, vector<128x128xbf16>, vector<16x128xf32> -> vector<16x128xf32>
    %c0_32 = arith.constant 0 : index
    %c0_33 = arith.constant 0 : index
    %68 = vector.load %arg10[%c0_32, %c0_33] : memref<1x128xf32, #tpu.memory_space<vmem>>, vector<1x128xf32>
    %69 = vector.broadcast %68 : vector<1x128xf32> to vector<16x128xf32>
    %70 = arith.addf %67, %69 : vector<16x128xf32>
    %71 = arith.addf %2, %70 : vector<16x128xf32>
    %c0_34 = arith.constant 0 : index
    %c0_35 = arith.constant 0 : index
    %72 = vector.load %arg11[%c0_34, %c0_35] : memref<3x128xf32, #tpu.memory_space<vmem>>, vector<3x128xf32>
    %73 = tpu.iota {dimensions = array<i32: 0>} : vector<16x1xi32>
    %c8_i32 = arith.constant 8 : i32
    %c0_i32 = arith.constant 0 : i32
    %74 = arith.cmpi eq, %c8_i32, %c0_i32 : i32
    %c1_i32 = arith.constant 1 : i32
    %75 = arith.select %74, %c1_i32, %c8_i32 : i32
    %76 = vector.broadcast %75 : i32 to vector<16x1xi32>
    %77 = arith.remsi %73, %76 : vector<16x1xi32>
    %c0_i32_36 = arith.constant 0 : i32
    %78 = vector.broadcast %c0_i32_36 : i32 to vector<16x1xi32>
    %79 = arith.cmpi ne, %77, %78 : vector<16x1xi32>
    %c0_i32_37 = arith.constant 0 : i32
    %80 = vector.broadcast %c0_i32_37 : i32 to vector<16x1xi32>
    %81 = arith.cmpi slt, %77, %80 : vector<16x1xi32>
    %c0_i32_38 = arith.constant 0 : i32
    %82 = arith.cmpi slt, %75, %c0_i32_38 : i32
    %83 = vector.broadcast %82 : i1 to vector<16x1xi1>
    %84 = vector.broadcast %83 : vector<16x1xi1> to vector<16x1xi1>
    %85 = arith.xori %81, %84 : vector<16x1xi1>
    %86 = arith.andi %85, %79 : vector<16x1xi1>
    %87 = vector.broadcast %75 : i32 to vector<16x1xi32>
    %88 = arith.addi %77, %87 : vector<16x1xi32>
    %89 = arith.select %86, %88, %77 : vector<16x1xi1>, vector<16x1xi32>
    %c0_i32_39 = arith.constant 0 : i32
    %90 = vector.broadcast %c0_i32_39 : i32 to vector<16x1xi32>
    %91 = arith.cmpi eq, %89, %90 : vector<16x1xi32>
    %c1_i32_40 = arith.constant 1 : i32
    %92 = tpu.dynamic_rotate %71 by %c1_i32_40 dim 0 : vector<16x128xf32>, i32 -> vector<16x128xf32>
    %cst_41 = arith.constant 0.000000e+00 : f32
    %93 = vector.shape_cast %91 : vector<16x1xi1> to vector<16x1xi1>
    %94 = vector.broadcast %93 : vector<16x1xi1> to vector<16x128xi1>
    %95 = vector.broadcast %cst_41 : f32 to vector<16x128xf32>
    %96 = arith.select %94, %95, %92 : vector<16x128xi1>, vector<16x128xf32>
    %c7_i32 = arith.constant 7 : i32
    %97 = vector.broadcast %c7_i32 : i32 to vector<16x1xi32>
    %98 = arith.cmpi eq, %89, %97 : vector<16x1xi32>
    %c15_i32 = arith.constant 15 : i32
    %99 = tpu.dynamic_rotate %71 by %c15_i32 dim 0 : vector<16x128xf32>, i32 -> vector<16x128xf32>
    %cst_42 = arith.constant 0.000000e+00 : f32
    %100 = vector.shape_cast %98 : vector<16x1xi1> to vector<16x1xi1>
    %101 = vector.broadcast %100 : vector<16x1xi1> to vector<16x128xi1>
    %102 = vector.broadcast %cst_42 : f32 to vector<16x128xf32>
    %103 = arith.select %101, %102, %99 : vector<16x128xi1>, vector<16x128xf32>
    %104 = vector.extract_strided_slice %72 {offsets = [0, 0], sizes = [1, 128], strides = [1, 1]} : vector<3x128xf32> to vector<1x128xf32>
    %105 = vector.broadcast %104 : vector<1x128xf32> to vector<16x128xf32>
    %106 = arith.mulf %96, %105 : vector<16x128xf32>
    %107 = vector.extract_strided_slice %72 {offsets = [1, 0], sizes = [1, 128], strides = [1, 1]} : vector<3x128xf32> to vector<1x128xf32>
    %108 = vector.broadcast %107 : vector<1x128xf32> to vector<16x128xf32>
    %109 = arith.mulf %71, %108 : vector<16x128xf32>
    %110 = arith.addf %106, %109 : vector<16x128xf32>
    %111 = vector.extract_strided_slice %72 {offsets = [2, 0], sizes = [1, 128], strides = [1, 1]} : vector<3x128xf32> to vector<1x128xf32>
    %112 = vector.broadcast %111 : vector<1x128xf32> to vector<16x128xf32>
    %113 = arith.mulf %103, %112 : vector<16x128xf32>
    %114 = arith.addf %110, %113 : vector<16x128xf32>
    %c0_43 = arith.constant 0 : index
    %c0_44 = arith.constant 0 : index
    %115 = vector.load %arg12[%c0_43, %c0_44] : memref<1x128xf32, #tpu.memory_space<vmem>>, vector<1x128xf32>
    %116 = vector.broadcast %115 : vector<1x128xf32> to vector<16x128xf32>
    %117 = arith.addf %114, %116 : vector<16x128xf32>
    %118 = arith.addf %71, %117 : vector<16x128xf32>
    %c0_45 = arith.constant 0 : index
    %c0_46 = arith.constant 0 : index
    %119 = vector.load %arg13[%c0_45, %c0_46] : memref<1x128xf32, #tpu.memory_space<vmem>>, vector<1x128xf32>
    %c0_47 = arith.constant 0 : index
    %c0_48 = arith.constant 0 : index
    %120 = vector.load %arg14[%c0_47, %c0_48] : memref<1x128xf32, #tpu.memory_space<vmem>>, vector<1x128xf32>
    %cst_49 = arith.constant dense<0.000000e+00> : vector<16xf32>
    %121 = vector.multi_reduction <add>, %118, %cst_49 [1] : vector<16x128xf32> to vector<16xf32>
    %122 = vector.shape_cast %121 : vector<16xf32> to vector<16x1xf32>
    %cst_50 = arith.constant 3.125000e-02 : f32
    %123 = vector.broadcast %cst_50 : f32 to vector<16x1xf32>
    %124 = arith.mulf %122, %123 : vector<16x1xf32>
    %125 = vector.broadcast %124 : vector<16x1xf32> to vector<16x128xf32>
    %126 = arith.subf %118, %125 : vector<16x128xf32>
    %127 = vector.broadcast %0 : vector<1x128xf32> to vector<16x128xf32>
    %128 = arith.mulf %126, %127 : vector<16x128xf32>
    %129 = arith.mulf %128, %128 : vector<16x128xf32>
    %cst_51 = arith.constant dense<0.000000e+00> : vector<16xf32>
    %130 = vector.multi_reduction <add>, %129, %cst_51 [1] : vector<16x128xf32> to vector<16xf32>
    %131 = vector.shape_cast %130 : vector<16xf32> to vector<16x1xf32>
    %cst_52 = arith.constant 3.125000e-02 : f32
    %132 = vector.broadcast %cst_52 : f32 to vector<16x1xf32>
    %133 = arith.mulf %131, %132 : vector<16x1xf32>
    %cst_53 = arith.constant 9.99999974E-6 : f32
    %134 = vector.broadcast %cst_53 : f32 to vector<16x1xf32>
    %135 = arith.addf %133, %134 : vector<16x1xf32>
    %136 = math.rsqrt %135 : vector<16x1xf32>
    %137 = vector.broadcast %136 : vector<16x1xf32> to vector<16x128xf32>
    %138 = arith.mulf %128, %137 : vector<16x128xf32>
    %139 = vector.broadcast %119 : vector<1x128xf32> to vector<16x128xf32>
    %140 = arith.mulf %138, %139 : vector<16x128xf32>
    %141 = vector.broadcast %120 : vector<1x128xf32> to vector<16x128xf32>
    %142 = arith.addf %140, %141 : vector<16x128xf32>
    %143 = arith.truncf %142 : vector<16x128xf32> to vector<16x128xbf16>
    %cst_54 = arith.constant 0.000000e+00 : f32
    %144 = vector.broadcast %cst_54 : f32 to vector<16x128xf32>
    %c0_55 = arith.constant 0 : index
    %c0_56 = arith.constant 0 : index
    %145 = vector.load %arg15[%c0_55, %c0_56] : memref<128x256xbf16, #tpu.memory_space<vmem>>, vector<128x256xbf16>
    %cst_57 = arith.constant dense<0.000000e+00> : vector<16x256xf32>
    %146 = tpu.matmul %143, %145, %cst_57 {dimension_numbers = #tpu.dot_dimension_numbers<[1], [0], [0], [1], [0, 0, 1, 1], [], []>} : vector<16x128xbf16>, vector<128x256xbf16>, vector<16x256xf32> -> vector<16x256xf32>
    %c0_58 = arith.constant 0 : index
    %c0_59 = arith.constant 0 : index
    %147 = vector.load %arg16[%c0_58, %c0_59] : memref<1x256xf32, #tpu.memory_space<vmem>>, vector<1x256xf32>
    %148 = vector.broadcast %147 : vector<1x256xf32> to vector<16x256xf32>
    %149 = arith.addf %146, %148 : vector<16x256xf32>
    %150 = vector.extract_strided_slice %149 {offsets = [0, 0], sizes = [16, 128], strides = [1, 1]} : vector<16x256xf32> to vector<16x128xf32>
    %151 = vector.extract_strided_slice %149 {offsets = [0, 128], sizes = [16, 128], strides = [1, 1]} : vector<16x256xf32> to vector<16x128xf32>
    %152 = arith.negf %151 : vector<16x128xf32>
    %153 = math.exp %152 : vector<16x128xf32>
    %cst_60 = arith.constant 1.000000e+00 : f32
    %154 = vector.broadcast %cst_60 : f32 to vector<16x128xf32>
    %155 = arith.addf %154, %153 : vector<16x128xf32>
    %156 = arith.divf %154, %155 : vector<16x128xf32>
    %cst_61 = arith.constant 5.000000e-01 : f32
    %157 = vector.broadcast %cst_61 : f32 to vector<16x128xf32>
    %158 = arith.mulf %157, %150 : vector<16x128xf32>
    %cst_62 = arith.constant 4.471500e-02 : f32
    %159 = vector.broadcast %cst_62 : f32 to vector<16x128xf32>
    %160 = arith.mulf %159, %150 : vector<16x128xf32>
    %161 = arith.mulf %160, %150 : vector<16x128xf32>
    %162 = arith.mulf %161, %150 : vector<16x128xf32>
    %163 = arith.addf %150, %162 : vector<16x128xf32>
    %cst_63 = arith.constant 0.797884583 : f32
    %164 = vector.broadcast %cst_63 : f32 to vector<16x128xf32>
    %165 = arith.mulf %164, %163 : vector<16x128xf32>
    %166 = math.tanh %165 : vector<16x128xf32>
    %cst_64 = arith.constant 1.000000e+00 : f32
    %167 = vector.broadcast %cst_64 : f32 to vector<16x128xf32>
    %168 = arith.addf %167, %166 : vector<16x128xf32>
    %169 = arith.mulf %158, %168 : vector<16x128xf32>
    %170 = arith.mulf %169, %156 : vector<16x128xf32>
    %171 = arith.truncf %170 : vector<16x128xf32> to vector<16x128xbf16>
    %c0_65 = arith.constant 0 : index
    %c0_66 = arith.constant 0 : index
    %172 = vector.load %arg17[%c0_65, %c0_66] : memref<128x128xbf16, #tpu.memory_space<vmem>>, vector<128x128xbf16>
    %cst_67 = arith.constant dense<0.000000e+00> : vector<16x128xf32>
    %173 = tpu.matmul %171, %172, %cst_67 {dimension_numbers = #tpu.dot_dimension_numbers<[1], [0], [0], [1], [0, 0, 1, 1], [], []>} : vector<16x128xbf16>, vector<128x128xbf16>, vector<16x128xf32> -> vector<16x128xf32>
    %174 = arith.addf %144, %173 : vector<16x128xf32>
    %c0_68 = arith.constant 0 : index
    %c0_69 = arith.constant 0 : index
    %175 = vector.load %arg18[%c0_68, %c0_69] : memref<1x128xf32, #tpu.memory_space<vmem>>, vector<1x128xf32>
    %176 = vector.broadcast %175 : vector<1x128xf32> to vector<16x128xf32>
    %177 = arith.addf %174, %176 : vector<16x128xf32>
    %178 = arith.addf %71, %177 : vector<16x128xf32>
    %179 = vector.shape_cast %178 : vector<16x128xf32> to vector<2x8x128xf32>
    %c0_70 = arith.constant 0 : index
    %c0_71 = arith.constant 0 : index
    %c0_72 = arith.constant 0 : index
    %180 = vector.load %arg19[%c0_70, %c0_71, %c0_72] : memref<2x8x128xf32, #tpu.memory_space<vmem>>, vector<2x8x128xf32>
    tpu.vector_store %arg19[%c0_70, %c0_71, %c0_72], %179 {strides = array<i32>} : memref<2x8x128xf32, #tpu.memory_space<vmem>>, vector<2x8x128xf32>,
    return
  }
  func.func @transform_0(%arg0: i32) -> (i32, i32, i32) {
    %c0_i32 = arith.constant 0 : i32
    %c0_i32_0 = arith.constant 0 : i32
    %c0_i32_1 = arith.constant 0 : i32
    return %arg0, %c0_i32, %c0_i32_0 : i32, i32, i32
  }
  func.func @transform_1(%arg0: i32) -> (i32, i32) {
    %c0_i32 = arith.constant 0 : i32
    %c0_i32_0 = arith.constant 0 : i32
    %c0_i32_1 = arith.constant 0 : i32
    return %c0_i32, %c0_i32_0 : i32, i32
  }
  func.func @transform_2(%arg0: i32) -> (i32, i32) {
    %c0_i32 = arith.constant 0 : i32
    %c0_i32_0 = arith.constant 0 : i32
    %c0_i32_1 = arith.constant 0 : i32
    return %c0_i32, %c0_i32_0 : i32, i32
  }
  func.func @transform_3(%arg0: i32) -> (i32, i32) {
    %c0_i32 = arith.constant 0 : i32
    %c0_i32_0 = arith.constant 0 : i32
    %c0_i32_1 = arith.constant 0 : i32
    return %c0_i32, %c0_i32_0 : i32, i32
  }
  func.func @transform_4(%arg0: i32) -> (i32, i32) {
    %c0_i32 = arith.constant 0 : i32
    %c0_i32_0 = arith.constant 0 : i32
    %c0_i32_1 = arith.constant 0 : i32
    return %c0_i32, %c0_i32_0 : i32, i32
  }
  func.func @transform_5(%arg0: i32) -> (i32, i32) {
    %c0_i32 = arith.constant 0 : i32
    %c0_i32_0 = arith.constant 0 : i32
    %c0_i32_1 = arith.constant 0 : i32
    return %c0_i32, %c0_i32_0 : i32, i32
  }
  func.func @transform_6(%arg0: i32) -> (i32, i32) {
    %c0_i32 = arith.constant 0 : i32
    %c0_i32_0 = arith.constant 0 : i32
    %c0_i32_1 = arith.constant 0 : i32
    return %c0_i32, %c0_i32_0 : i32, i32
  }
  func.func @transform_7(%arg0: i32) -> (i32, i32) {
    %c0_i32 = arith.constant 0 : i32
    %c0_i32_0 = arith.constant 0 : i32
    %c0_i32_1 = arith.constant 0 : i32
    return %c0_i32, %c0_i32_0 : i32, i32
  }
  func.func @transform_8(%arg0: i32) -> (i32, i32) {
    %c0_i32 = arith.constant 0 : i32
    %c0_i32_0 = arith.constant 0 : i32
    %c0_i32_1 = arith.constant 0 : i32
    return %c0_i32, %c0_i32_0 : i32, i32
  }
  func.func @transform_9(%arg0: i32) -> (i32, i32) {
    %c0_i32 = arith.constant 0 : i32
    %c0_i32_0 = arith.constant 0 : i32
    %c0_i32_1 = arith.constant 0 : i32
    return %c0_i32, %c0_i32_0 : i32, i32
  }
  func.func @transform_10(%arg0: i32) -> (i32, i32) {
    %c0_i32 = arith.constant 0 : i32
    %c0_i32_0 = arith.constant 0 : i32
    %c0_i32_1 = arith.constant 0 : i32
    return %c0_i32, %c0_i32_0 : i32, i32
  }
  func.func @transform_11(%arg0: i32) -> (i32, i32) {
    %c0_i32 = arith.constant 0 : i32
    %c0_i32_0 = arith.constant 0 : i32
    %c0_i32_1 = arith.constant 0 : i32
    return %c0_i32, %c0_i32_0 : i32, i32
  }
  func.func @transform_12(%arg0: i32) -> (i32, i32) {
    %c0_i32 = arith.constant 0 : i32
    %c0_i32_0 = arith.constant 0 : i32
    %c0_i32_1 = arith.constant 0 : i32
    return %c0_i32, %c0_i32_0 : i32, i32
  }
  func.func @transform_13(%arg0: i32) -> (i32, i32) {
    %c0_i32 = arith.constant 0 : i32
    %c0_i32_0 = arith.constant 0 : i32
    %c0_i32_1 = arith.constant 0 : i32
    return %c0_i32, %c0_i32_0 : i32, i32
  }
  func.func @transform_14(%arg0: i32) -> (i32, i32) {
    %c0_i32 = arith.constant 0 : i32
    %c0_i32_0 = arith.constant 0 : i32
    %c0_i32_1 = arith.constant 0 : i32
    return %c0_i32, %c0_i32_0 : i32, i32
  }
  func.func @transform_15(%arg0: i32) -> (i32, i32) {
    %c0_i32 = arith.constant 0 : i32
    %c0_i32_0 = arith.constant 0 : i32
    %c0_i32_1 = arith.constant 0 : i32
    return %c0_i32, %c0_i32_0 : i32, i32
  }
  func.func @transform_16(%arg0: i32) -> (i32, i32) {
    %c0_i32 = arith.constant 0 : i32
    %c0_i32_0 = arith.constant 0 : i32
    %c0_i32_1 = arith.constant 0 : i32
    return %c0_i32, %c0_i32_0 : i32, i32
  }
  func.func @transform_17(%arg0: i32) -> (i32, i32) {
    %c0_i32 = arith.constant 0 : i32
    %c0_i32_0 = arith.constant 0 : i32
    %c0_i32_1 = arith.constant 0 : i32
    return %c0_i32, %c0_i32_0 : i32, i32
  }
  func.func @transform_18(%arg0: i32) -> (i32, i32, i32) {
    %c0_i32 = arith.constant 0 : i32
    %c0_i32_0 = arith.constant 0 : i32
    %c0_i32_1 = arith.constant 0 : i32
    return %arg0, %c0_i32, %c0_i32_0 : i32, i32, i32
  }
}

</mosaic_0001>

<bundles_post_ra>
// kernel: tpu_custom_call.1
= control target key start
LH: loop header
LB: loop body
LE: loop exit
PB: predicated region body
PF: predicated region fallthrough
CT: control target
= control target key end

     0   :  { %s4218_s0 = inlined_call_operand.vmem [shape: f32[4,8,128], index: 0, kind: input, shape index: {}]   ;;  %s4219_s1 = inlined_call_operand.vmem [shape: f32[1,128], index: 1, kind: input, shape index: {}]   ;;  %s4220_s2 = inlined_call_operand.hbm [shape: f32[1,128], index: 2, kind: input, shape index: {}]   ;;  %s4221_s3 = inlined_call_operand.hbm [shape: f32[1,128], index: 3, kind: input, shape index: {}]   ;;  %s4222_s4 = inlined_call_operand.hbm [shape: bf16[128,384], index: 4, kind: input, shape index: {}]   ;;  %s4223_s5 = inlined_call_operand.hbm [shape: bf16[128,128], index: 5, kind: input, shape index: {}]   ;;  %s4224_s6 = inlined_call_operand.vmem [shape: f32[128,8], index: 6, kind: input, shape index: {}]   ;;  %s4225_s7 = inlined_call_operand.hbm [shape: f32[8,128], index: 7, kind: input, shape index: {}]   ;;  %s4226_s8 = inlined_call_operand.hbm [shape: bf16[128,128], index: 8, kind: input, shape index: {}]   ;;  %s4227_s9 = inlined_call_operand.hbm [shape: f32[1,128], index: 9, kind: input, shape index: {}]   ;;  %s4228_s10 = inlined_call_operand.hbm [shape: f32[3,128], index: 10, kind: input, shape index: {}]   ;;  %s4229_s11 = inlined_call_operand.hbm [shape: f32[1,128], index: 11, kind: input, shape index: {}]   ;;  %s4230_s12 = inlined_call_operand.hbm [shape: f32[1,128], index: 12, kind: input, shape index: {}]   ;;  %s4231_s13 = inlined_call_operand.hbm [shape: f32[1,128], index: 13, kind: input, shape index: {}]   ;;  %s4232_s14 = inlined_call_operand.vmem [shape: bf16[128,256], index: 14, kind: input, shape index: {}]   ;;  %s4233_s15 = inlined_call_operand.vmem [shape: f32[1,256], index: 15, kind: input, shape index: {}]   ;;  %s4234_s16 = inlined_call_operand.hbm [shape: bf16[128,128], index: 16, kind: input, shape index: {}]   ;;  %s4235_s17 = inlined_call_operand.vmem [shape: f32[1,128], index: 17, kind: input, shape index: {}]   ;;  %s4236_s18 = inlined_call_operand.hbm [shape: f32[4,8,128], index: 18, kind: output, shape index: {}]  }
   0x1   :  { %4248 = sst [smem:[#allocation37_spill]] %s4218_s0 }
   0x2   :  { %4249 = sst [smem:[#allocation38_spill]] %s4219_s1 }
   0x3   :  { %4250 = sst [smem:[#allocation39_spill]] %s4220_s2 }
   0x4   :  { %4251 = sst [smem:[#allocation40_spill]] %s4221_s3 }
   0x5   :  { %4252 = sst [smem:[#allocation41_spill]] %s4223_s5 }
   0x6   :  { %23 = vsyncpa [#allocation3], 0 }
   0x7   :  { %24 = vsyncpa [#allocation6], 0 }
   0x8   :  { %25 = vsyncpa [#allocation9], 0 }
   0x9   :  { %26 = vsyncpa [#allocation12], 0 }
   0xa   :  { %27 = vsyncpa [#allocation15], 0 }
   0xb   :  { %28 = vsyncpa [#allocation18], 0 }
   0xc   :  { %29 = vsyncpa [#allocation21], 0 }
   0xd   :  { %30 = vsyncpa [#allocation4], 0 }
   0xe   :  { %32 = vsyncpa [#allocation4 + $0x1], 0  ;;  %s3648_s27 = smov 0   ;;  %s3650_s28 = smov 0  }
   0xf   :  { %s3652_s29 = smov 0   ;;  %s3654_s30 = smov 0  }
  0x10 LB: > { %4253 = sst [smem:[#allocation31_spill]] %s3517_s27  ;;  %s3669_s0 = sadd.s32 4294967295, %s3529_s30   ;;  %s3529_s30 = sphi %s3654_s30, %s4299_s30   ;;  %s3525_s29 = sphi %s3652_s29, %s4301_s29   ;;  %s3521_s28 = sphi %s3650_s28, %s4303_s28   ;;  %s3517_s27 = sphi %s3648_s27, %s4302_s27  }
  0x11   : > { %4254 = sst [smem:[#allocation32_spill]] %s3525_s29  ;;  %s2432_s19 = sadd.s32 4294967294, %s3529_s30  }
  0x12   : > { %4255 = sst [smem:[#allocation33_spill]] %s3529_s30  ;;  %s3673_s1 = sadd.s32 1, %s3529_s30  }
  0x13   : > { %4256 = sst [smem:[#allocation34_spill]] %s3673_s1  ;;  %s428_s20 = sadd.s32 1, %s3525_s29 }
  0x14   : > { %s425_s21 = ssub.s32 %s3529_s30, %s3673_s1  ;;  %p438_p0 = scmp.ne.s32.totalorder %s3525_s29, %s3521_s28 }
  0x15   : > { %p426_p1 = scmp.eq.s32.totalorder %s425_s21, 0  ;;  %p439_p2 = scmp.eq.s32.totalorder %s3669_s0, 1 }
  0x16   : > { %p444_p3 = scmp.ne.s32.totalorder %s3521_s28, %s3517_s27  ;;  %p445_p4 = scmp.eq.s32.totalorder %s2432_s19, 1 }
  0x17   : > { %s3684_s22 = scalar_select %p426_p1, %s3525_s29, %s428_s20  }
  0x18   : > { %p3686_p5 = por %p439_p2, %p438_p0  ;;  %p3690_p6 = por %p445_p4, %p444_p3 }
  0x19   : > { %4257 = sst [smem:[#allocation35_spill]] %s3684_s22  ;;  %p2433_p7 = scmp.ge.s32.totalorder %s3529_s30, 1 }
  0x1a   : > { %s4258_s2 = scalar_select %p3686_p5, 1, 0 }
  0x1b   : > { %s4259_s23 = scalar_select %p3690_p6, 1, 0 }
  0x1c   : > { %p452_p8 = scmp.lt.s32.totalorder %s3529_s30, 3  ;;  %p4242_p9 = scmp.eq.s32.totalorder %s3669_s0, 0 }
  0x1d   : > { %4260 = sst [smem:[#allocation36_spill]] %s4259_s23  ;;  %s3531_s25 = smov [#allocation5]  }
  0x1e   : > { %p3697_p10 = pnand %p2433_p7, %p452_p8  ;;  %s479_s26 = sshll.u32 %s3531_s25, 4  ;;  %s480_s26 = int_to_ptr.vmem [resolvable:$true] %s479_s26 }
  0x1f   : > { %s3532_s19 = smov [#allocation8]   ;;  %s3533_s22 = smov [#allocation11]  }
  0x20   : > { %s4261_s24 = scalar_select %p3697_p10, 1, 0 }
  0x21   : > { %p2912_p11 = pneg %p3697_p10  ;;  %s502_s20 = sshll.u32 %s3532_s19, 4  ;;  %s3709_s20 = int_to_ptr.vmem [resolvable:$true] %s502_s20 }
  0x22   : > { %s529_s29 = sshll.u32 %s3533_s22, 4  ;;  %s3140_s25 = scalar_lea.vmem %s480_s26, 16  ;;  %s530_s29 = int_to_ptr.vmem [resolvable:$true] %s529_s29 }
  0x23   : > { %p3705_p12 = pnand %p4242_p9, %p2912_p11  ;;  %p3141_p0 = scmp.ne.s32.totalorder %s480_s26, %s3140_s25 }
  0x24   : > { %s3147_s19 = scalar_lea.vmem %s480_s26, 32  ;;  %p3148_p3 = scmp.lt.s32.totalorder %s480_s26, %s480_s26 }
  0x25   : > { %p3713_p13 = pneg %p3705_p12  ;;  %p3149_p4 = scmp.lt.s32.totalorder %s3147_s19, %s3140_s25 }
  0x27   : > { %p3143_p1 = pnand %p3141_p0, %p3713_p13  ;;  %p3150_p7 = por %p3149_p4, %p3148_p3 }
  0x29   : > { %p3144_p2 = pneg %p3143_p1 }
  0x2b   : > { %p3151_p8 = pnand %p3150_p7, %p3144_p2 }
  0x2d   : > { %3154 = shalt.err (!%p3151_p8)
}
  0x2e   : > { %s4264_s3 = sld [smem:[#allocation40_spill]]  ;;  %s3166_s27 = scalar_lea.vmem %s3709_s20, 1024 }
  0x2f   : > { %p3167_p11 = scmp.ne.s32.totalorder %s3709_s20, %s3166_s27  ;;  %p3174_p9 = scmp.lt.s32.totalorder %s3709_s20, %s3709_s20 }
  0x30   : > { %p3175_p3 = scmp.lt.s32.totalorder %s3166_s27, %s3166_s27 }
  0x31   : > { %p3169_p0 = pnand %p3167_p11, %p3713_p13 }
  0x32   : > { %p3176_p2 = por %p3175_p3, %p3174_p9 }
  0x33   : > { %p3170_p1 = pneg %p3169_p0 }
  0x34   : > { %2918 = dma.hbm_to_vmem [thread:$0]  (!%p3705_p12), %s4264_s3, 16, %s480_s26, [#allocation6]  }
  0x35   : > { %p3177_p4 = pnand %p3176_p2, %p3170_p1 }
  0x37   : > { %3180 = shalt.err (!%p3177_p4)
}
  0x38   : > { %s4245_s25 = smov 64   ;;  %s4247_s23 = smov 4  }
  0x39   : > { %s4265_s5 = sld [smem:[#allocation41_spill]]  ;;  %s3192_s22 = scalar_lea.vmem %s530_s29, 1024 }
  0x3a   : > { %p3193_p7 = scmp.ne.s32.totalorder %s530_s29, %s3192_s22  ;;  %p3200_p11 = scmp.lt.s32.totalorder %s530_s29, %s530_s29 }
  0x3b   : > { %p3201_p0 = scmp.lt.s32.totalorder %s3192_s22, %s3192_s22 }
  0x3c   : > { %p3195_p9 = pnand %p3193_p7, %p3713_p13 }
  0x3d   : > { %p3202_p1 = por %p3201_p0, %p3200_p11 }
  0x3e   : > { %p3196_p8 = pneg %p3195_p9 }
  0x3f   : > { %2924 = dma.hbm_to_vmem [thread:$0]  (!%p3705_p12), %s4265_s5, 1024, %s3709_s20, [#allocation9], %s4245_s25, %s4245_s25, %s4247_s23  }
  0x40   : > { %p3203_p3 = pnand %p3202_p1, %p3196_p8 }
  0x42   : > { %3206 = shalt.err (!%p3203_p3)
}
  0x43   : > { %2930 = dma.hbm_to_vmem [thread:$0]  (!%p3705_p12), %s4226_s8, 1024, %s530_s29, [#allocation12], %s4245_s25, %s4245_s25, %s4247_s23  }
  0x44   : > { %s3536_s20 = smov [#allocation14]   ;;  %s3537_s19 = smov [#allocation17]  }
  0x45   : > { %s554_s26 = sshll.u32 %s3536_s20, 4  ;;  %s576_s5 = sshll.u32 %s3537_s19, 4  ;;  %s555_s26 = int_to_ptr.vmem [resolvable:$true] %s554_s26  ;;  %s577_s5 = int_to_ptr.vmem [resolvable:$true] %s576_s5 }
  0x46   : > { %s3218_s30 = scalar_lea.vmem %s555_s26, 64  ;;  %p3226_p9 = scmp.lt.s32.totalorder %s555_s26, %s555_s26 }
  0x47   : > { %p3219_p2 = scmp.ne.s32.totalorder %s555_s26, %s3218_s30  ;;  %p3227_p8 = scmp.lt.s32.totalorder %s3218_s30, %s3218_s30 }
  0x49   : > { %p3221_p4 = pnand %p3219_p2, %p3713_p13  ;;  %p3228_p11 = por %p3227_p8, %p3226_p9 }
  0x4b   : > { %p3222_p7 = pneg %p3221_p4 }
  0x4d   : > { %p3229_p0 = pnand %p3228_p11, %p3222_p7 }
  0x4f   : > { %3232 = shalt.err (!%p3229_p0)
}
  0x50   : > { %2936 = dma.hbm_to_vmem [thread:$0]  (!%p3705_p12), %s4228_s10, 64, %s555_s26, [#allocation15]  }
  0x51   : > { %s3244_s29 = scalar_lea.vmem %s577_s5, 16  ;;  %s3251_s27 = scalar_lea.vmem %s577_s5, 32 }
  0x52   : > { %p3245_p1 = scmp.ne.s32.totalorder %s577_s5, %s3244_s29  ;;  %p3252_p2 = scmp.lt.s32.totalorder %s577_s5, %s577_s5 }
  0x53   : > { %p3253_p4 = scmp.lt.s32.totalorder %s3251_s27, %s3244_s29 }
  0x54   : > { %p3247_p3 = pnand %p3245_p1, %p3713_p13 }
  0x55   : > { %p3254_p5 = por %p3253_p4, %p3252_p2 }
  0x56   : > { %p3248_p6 = pneg %p3247_p3 }
  0x58   : > { %p3255_p9 = pnand %p3254_p5, %p3248_p6 }
  0x5a   : > { %3258 = shalt.err (!%p3255_p9)
}
  0x5b   : > { %2942 = dma.hbm_to_vmem [thread:$0]  (!%p3705_p12), %s4230_s12, 16, %s577_s5, [#allocation18]  }
  0x5c   : > { %s3538_s26 = smov [#allocation2]   ;;  %s3539_s3 = smov [#allocation7]  }
  0x5d   : > { %s468_s19 = sshll.u32 %s3538_s26, 4  ;;  %s489_s22 = sshll.u32 %s3539_s3, 4  ;;  %s469_s19 = int_to_ptr.vmem [resolvable:$true] %s468_s19  ;;  %s490_s22 = int_to_ptr.vmem [resolvable:$true] %s489_s22 }
  0x5e   : > { %s3270_s25 = scalar_lea.vmem %s469_s19, 16  ;;  %s3277_s29 = scalar_lea.vmem %s469_s19, 32 }
  0x5f   : > { %p3271_p7 = scmp.ne.s32.totalorder %s469_s19, %s3270_s25  ;;  %p3278_p5 = scmp.lt.s32.totalorder %s469_s19, %s469_s19 }
  0x60   : > { %p3279_p6 = scmp.lt.s32.totalorder %s3277_s29, %s3270_s25 }
  0x61   : > { %p3273_p8 = pnand %p3271_p7, %p3713_p13 }
  0x62   : > { %p3280_p0 = por %p3279_p6, %p3278_p5 }
  0x63   : > { %p3274_p11 = pneg %p3273_p8 }
  0x65   : > { %p3281_p1 = pnand %p3280_p0, %p3274_p11 }
  0x67   : > { %3284 = shalt.err (!%p3281_p1)
}
  0x68   : > { %s4266_s30 = sld [smem:[#allocation39_spill]]  ;;  %s3296_s20 = scalar_lea.vmem %s490_s22, 3072 }
  0x69   : > { %p3297_p3 = scmp.ne.s32.totalorder %s490_s22, %s3296_s20  ;;  %p3304_p9 = scmp.lt.s32.totalorder %s490_s22, %s490_s22 }
  0x6a   : > { %p3305_p7 = scmp.lt.s32.totalorder %s3296_s20, %s3296_s20 }
  0x6b   : > { %p3299_p2 = pnand %p3297_p3, %p3713_p13 }
  0x6c   : > { %p3306_p8 = por %p3305_p7, %p3304_p9 }
  0x6d   : > { %p3300_p4 = pneg %p3299_p2 }
  0x6e   : > { %2915 = dma.hbm_to_vmem [thread:$0]  (!%p3705_p12), %s4266_s30, 16, %s469_s19, [#allocation3]  }
  0x6f   : > { %p3307_p10 = pnand %p3306_p8, %p3300_p4 }
  0x71   : > { %3310 = shalt.err (!%p3307_p10)
}
  0x72   : > { %s3540_s25 = smov 192   ;;  %s3541_s26 = smov 12  }
  0x73   : > { %2921 = dma.hbm_to_vmem [thread:$0]  (!%p3705_p12), %s4222_s4, 3072, %s490_s22, [#allocation6], %s3540_s25, %s3540_s25, %s3541_s26  }
  0x74   : > { %s3542_s19 = smov [#allocation10]   ;;  %s3543_s5 = smov [#allocation13]  }
  0x75   : > { %s519_s27 = sshll.u32 %s3542_s19, 4  ;;  %s543_s30 = sshll.u32 %s3543_s5, 4  ;;  %s520_s27 = int_to_ptr.vmem [resolvable:$true] %s519_s27  ;;  %s544_s30 = int_to_ptr.vmem [resolvable:$true] %s543_s30 }
  0x76   : > { %s3322_s23 = scalar_lea.vmem %s520_s27, 128  ;;  %p3330_p10 = scmp.lt.s32.totalorder %s520_s27, %s520_s27 }
  0x77   : > { %p3323_p11 = scmp.ne.s32.totalorder %s520_s27, %s3322_s23  ;;  %p3331_p0 = scmp.lt.s32.totalorder %s3322_s23, %s3322_s23 }
  0x79   : > { %p3325_p5 = pnand %p3323_p11, %p3713_p13  ;;  %p3332_p1 = por %p3331_p0, %p3330_p10 }
  0x7b   : > { %p3326_p6 = pneg %p3325_p5 }
  0x7d   : > { %p3333_p3 = pnand %p3332_p1, %p3326_p6 }
  0x7f   : > { %3336 = shalt.err (!%p3333_p3)
}
  0x80   : > { %2927 = dma.hbm_to_vmem [thread:$0]  (!%p3705_p12), %s4225_s7, 128, %s520_s27, [#allocation9]  }
  0x81   : > { %s3348_s22 = scalar_lea.vmem %s544_s30, 16  ;;  %s3355_s25 = scalar_lea.vmem %s544_s30, 32 }
  0x82   : > { %p3349_p2 = scmp.ne.s32.totalorder %s544_s30, %s3348_s22  ;;  %p3356_p7 = scmp.lt.s32.totalorder %s544_s30, %s544_s30 }
  0x83   : > { %p3357_p8 = scmp.lt.s32.totalorder %s3355_s25, %s3348_s22 }
  0x84   : > { %p3351_p4 = pnand %p3349_p2, %p3713_p13 }
  0x85   : > { %p3358_p11 = por %p3357_p8, %p3356_p7 }
  0x86   : > { %p3352_p9 = pneg %p3351_p4 }
  0x88   : > { %p3359_p5 = pnand %p3358_p11, %p3352_p9 }
  0x8a   : > { %3362 = shalt.err (!%p3359_p5)
}
  0x8b   : > { %2933 = dma.hbm_to_vmem [thread:$0]  (!%p3705_p12), %s4227_s9, 16, %s544_s30, [#allocation12]  }
  0x8c   : > { %s3544_s29 = smov [#allocation16]   ;;  %s3545_s27 = smov [#allocation19]  }
  0x8d   : > { %s565_s19 = sshll.u32 %s3544_s29, 4  ;;  %s587_s5 = sshll.u32 %s3545_s27, 4  ;;  %s566_s19 = int_to_ptr.vmem [resolvable:$true] %s565_s19  ;;  %s588_s5 = int_to_ptr.vmem [resolvable:$true] %s587_s5 }
  0x8e   : > { %s3374_s20 = scalar_lea.vmem %s566_s19, 16  ;;  %s3381_s3 = scalar_lea.vmem %s566_s19, 32 }
  0x8f   : > { %p3375_p6 = scmp.ne.s32.totalorder %s566_s19, %s3374_s20  ;;  %p3382_p1 = scmp.lt.s32.totalorder %s566_s19, %s566_s19 }
  0x90   : > { %p3383_p3 = scmp.lt.s32.totalorder %s3381_s3, %s3374_s20 }
  0x91   : > { %p3377_p10 = pnand %p3375_p6, %p3713_p13 }
  0x92   : > { %p3384_p2 = por %p3383_p3, %p3382_p1 }
  0x93   : > { %p3378_p0 = pneg %p3377_p10 }
  0x95   : > { %p3385_p4 = pnand %p3384_p2, %p3378_p0 }
  0x97   : > { %3388 = shalt.err (!%p3385_p4)
}
  0x98   : > { %2939 = dma.hbm_to_vmem [thread:$0]  (!%p3705_p12), %s4229_s11, 16, %s566_s19, [#allocation15]  }
  0x99   : > { %s3400_s25 = scalar_lea.vmem %s588_s5, 16  ;;  %s3407_s23 = scalar_lea.vmem %s588_s5, 32 }
  0x9a   : > { %p3401_p9 = scmp.ne.s32.totalorder %s588_s5, %s3400_s25  ;;  %p3408_p11 = scmp.lt.s32.totalorder %s588_s5, %s588_s5 }
  0x9b   : > { %p3409_p5 = scmp.lt.s32.totalorder %s3407_s23, %s3400_s25 }
  0x9c   : > { %p3403_p7 = pnand %p3401_p9, %p3713_p13 }
  0x9d   : > { %p3410_p6 = por %p3409_p5, %p3408_p11 }
  0x9e   : > { %p3404_p8 = pneg %p3403_p7 }
  0xa0   : > { %p3411_p10 = pnand %p3410_p6, %p3404_p8 }
  0xa2   : > { %3414 = shalt.err (!%p3411_p10)
}
  0xa3   : > { %2945 = dma.hbm_to_vmem [thread:$0]  (!%p3705_p12), %s4231_s13, 16, %s588_s5, [#allocation18]  }
  0xa4   : > { %s3546_s19 = smov [#allocation20]  }
  0xa5   : > { %s603_s27 = sshll.u32 %s3546_s19, 4  ;;  %s604_s27 = int_to_ptr.vmem [resolvable:$true] %s603_s27 }
  0xa6   : > { %s3426_s20 = scalar_lea.vmem %s604_s27, 1024  ;;  %p3434_p2 = scmp.lt.s32.totalorder %s604_s27, %s604_s27 }
  0xa7   : > { %p3427_p0 = scmp.ne.s32.totalorder %s604_s27, %s3426_s20  ;;  %p3435_p4 = scmp.lt.s32.totalorder %s3426_s20, %s3426_s20 }
  0xa9   : > { %p3429_p1 = pnand %p3427_p0, %p3713_p13  ;;  %p3436_p9 = por %p3435_p4, %p3434_p2 }
  0xab   : > { %p3430_p3 = pneg %p3429_p1 }
  0xad   : > { %p3437_p7 = pnand %p3436_p9, %p3430_p3 }
  0xaf   : > { %3440 = shalt.err (!%p3437_p7)
}
  0xb0   : > { %s4267_s3 = smov 4   ;;  %s4268_s22 = smov 64  }
  0xb1   : > { %2948 = dma.hbm_to_vmem [thread:$0]  (!%p3705_p12), %s4234_s16, 1024, %s604_s27, [#allocation21], %s4268_s22, %s4268_s22, %s4267_s3  }
  0xb2   : > { %p4269_p8 = scmp.ne.s32.totalorder %s4261_s24, 0 }
  0xb3   : > { %p4270_p13 = scmp.eq.s32.totalorder (!%p4269_p8), %s3669_s0, 0 }
  0xb4   : > { %631 = sbr.rel (%p4269_p8) target bundleno = 2512 (0x9d0), region = 92 }
  0xb9   : > { %3484 = dma.done.wait (%p4270_p13), [#allocation3], 16   ;;  %p4271_p11 = pmov %p4270_p13 }
  0xbb   : > { %3486 = vsyncadd (%p4271_p11), [#allocation3], 4294967280  ;;  %p4272_p5 = pmov %p4271_p11 }
  0xbd   : > { %3488 = dma.done.wait (%p4272_p5), [#allocation6], 3088   ;;  %p4273_p6 = pmov %p4272_p5 }
  0xbe   : > { %p4274_p10 = pmov %p4272_p5 }
  0xbf   : > { %3490 = vsyncadd (%p4273_p6), [#allocation6], 4294964208 }
  0xc0   : > { %3492 = dma.done.wait (%p4274_p10), [#allocation9], 1152   ;;  %p4275_p12 = pmov %p4272_p5 }
  0xc1   : > { %p4276_p0 = pmov %p4272_p5 }
  0xc2   : > { %3494 = vsyncadd (%p4275_p12), [#allocation9], 4294966144 }
  0xc3   : > { %3496 = dma.done.wait (%p4276_p0), [#allocation12], 1040   ;;  %p4277_p1 = pmov %p4276_p0 }
  0xc4   : > { %p4278_p3 = pmov %p4276_p0 }
  0xc5   : > { %3498 = vsyncadd (%p4277_p1), [#allocation12], 4294966256 }
  0xc6   : > { %3500 = dma.done.wait (%p4278_p3), [#allocation15], 80   ;;  %p4279_p2 = pmov %p4276_p0 }
  0xc7   : > { %p4280_p4 = pmov %p4276_p0 }
  0xc8   : > { %3502 = vsyncadd (%p4279_p2), [#allocation15], 4294967216 }
  0xc9   : > { %3504 = dma.done.wait (%p4280_p4), [#allocation18], 32   ;;  %p4281_p9 = pmov %p4276_p0 }
  0xca   : > { %p4282_p7 = pmov %p4276_p0 }
  0xcb   : > { %3506 = vsyncadd (%p4281_p9), [#allocation18], 4294967264 }
  0xcc   : > { %3508 = dma.done.wait (%p4282_p7), [#allocation21], 1024   ;;  %p4283_p8 = pmov %p4276_p0 }
  0xcd   : > { %s2461_s1 = sshll.u32 %s3669_s0, 1  ;;  %s4284_s23 = sld [smem:[#allocation37_spill]]  ;;  %v3031_v2 = vld [vmem:[#allocation7 + $0xac] ss:$12 sps:$4 sm:$0xff]   ;;  %v3033_v3 = vld [vmem:[#allocation7 + $0xa8] ss:$12 sps:$4 sm:$0xff]  }
  0xce   : > { %3510 = vsyncadd (%p4283_p8), [#allocation21], 4294966272  ;;  %p730_p13 = scmp.lt.s32.totalorder %s2461_s1, 3  ;;  %v3547_v4 = vmov 0.0   ;;  %v3034_v5 = vld [vmem:[#allocation7 + $0xb0] ss:$12 sps:$4 sm:$0xff]   ;;  %949 = vmatprep.subr.bf16.mxu0 %v3031_v2 }
  0xcf   : > { %2684 = vmatprep.subr.bf16.mxu1 %v3547_v4  ;;  %950 = vmatpush1.bf16.msra.mxu0 %v3033_v3  ;;  %s4285_s27 = sld [smem:[#allocation38_spill]]  ;;  %v3035_v17 = vld [vmem:[#allocation7 + $0x94] ss:$12 sps:$4 sm:$0xff]   ;;  %v3037_v18 = vld [vmem:[#allocation7 + $0x90] ss:$12 sps:$4 sm:$0xff]   ;;  %v3548_v30 = vmov 0  }
  0xd0   : > { %s4305_s1 = smov (!%p730_p13, %s2461_s1), 3  ;;  %2685 = vmatpush3.bf16.msra.mxu1 %v3034_v5  ;;  %v3038_v19 = vld [vmem:[#allocation7 + $0x98] ss:$12 sps:$4 sm:$0xff]   ;;  %951 = vmatprep.subr.bf16.mxu0 %v3035_v17  ;;  %v3039_v20 = vld [vmem:[#allocation7 + $0x7c] ss:$12 sps:$4 sm:$0xff]   ;;  %vm3549_vm0 = vmmov 0  }
  0xd1   : > { %s2462_s24 = sshll.u32 %s4305_s1, 3  ;;  %2686 = vmatprep.subr.bf16.mxu1 %v3547_v4  ;;  %v3041_v21 = vld [vmem:[#allocation7 + $0x78] ss:$12 sps:$4 sm:$0xff]   ;;  %v3042_v22 = vld [vmem:[#allocation7 + $0x80] ss:$12 sps:$4 sm:$0xff]   ;;  %981 = vmatprep.mubr.bf16.mxu0 %v3548_v30  ;;  %vm1098_vm1 = vcmask 1043456  }
  0xd2   : > { %v3043_v23 = vld [vmem:[#allocation7 + $0x64] ss:$12 sps:$4 sm:$0xff]   ;;  %v3045_v24 = vld [vmem:[#allocation7 + $0x60] ss:$12 sps:$4 sm:$0xff]   ;;  %v3046_v25 = vld [vmem:[#allocation7 + $0x68] ss:$12 sps:$4 sm:$0xff]   ;;  %2700 = vmatprep.mubr.msk.bf16.mxu1 %vm3549_vm0, %v3547_v4 }
  0xd3   : > { %s3849_s26 = scalar_lea.vmem %s4284_s23, %s2462_s24  ;;  %952 = vmatpush1.bf16.msra.mxu0 %v3037_v18  ;;  %v3047_v26 = vld [vmem:[#allocation7 + $0x4c] ss:$12 sps:$4 sm:$0xff]   ;;  %v3049_v27 = vld [vmem:[#allocation7 + $0x48] ss:$12 sps:$4 sm:$0xff]   ;;  %v3050_v28 = vld [vmem:[#allocation7 + $0x50] ss:$12 sps:$4 sm:$0xff]  }
  0xd4   : > { %v738_v0 = vld [vmem:[%s3849_s26] sm:$0xff]  ;;  %v739_v1 = vld [vmem:[%s3849_s26 + $0x8] sm:$0xff]  ;;  %2687 = vmatpush3.bf16.msra.mxu1 %v3038_v19  ;;  %953 = vmatprep.subr.bf16.mxu0 %v3039_v20  ;;  %vm1073_vm2 = vcmask 64512   ;;  %s726_s19 = sand.u32 1, %s3521_s28   ;;  %s2560_s5 = sshll.u32 %s3669_s0, 8 }
  0xd5   : > { %742 = vadd.xlane.f32.xlu0 %v738_v0  ;;  %v3858_v8 = vld [vmem:[%s4285_s27] ss:$0 sm:$0xff]  ;;  %2688 = vmatprep.subr.bf16.mxu1 %v3547_v4  ;;  %v3051_v29 = vld [vmem:[#allocation7 + $0x34] ss:$12 sps:$4 sm:$0xff]   ;;  %v3054_v32 = vld [vmem:[#allocation7 + $0x38] ss:$12 sps:$4 sm:$0xff]   ;;  %s4175_s24 = scalar_lea.hbm %s4236_s18, %s2560_s5 }
  0xd6   : > { %v3053_v31 = vld [vmem:[#allocation7 + $0x30] ss:$12 sps:$4 sm:$0xff]   ;;  %v3057_v34 = vld [vmem:[#allocation7 + $0x18] ss:$12 sps:$4 sm:$0xff]   ;;  %v3058_v35 = vld [vmem:[#allocation7 + $0x20] ss:$12 sps:$4 sm:$0xff]  }
  0xd7   : > { %954 = vmatpush1.bf16.msra.mxu0 %v3041_v21  ;;  %v3055_v33 = vld [vmem:[#allocation7 + $0x1c] ss:$12 sps:$4 sm:$0xff]   ;;  %v3059_v36 = vld [vmem:[#allocation7 + $0x4] ss:$12 sps:$4 sm:$0xff]   ;;  %v3061_v37 = vld [vmem:[#allocation7] ss:$12 sps:$4 sm:$0xff]  }
  0xd8   : > { %2689 = vmatpush3.bf16.msra.mxu1 %v3042_v22  ;;  %955 = vmatprep.subr.bf16.mxu0 %v3043_v23  ;;  %v3062_v38 = vld [vmem:[#allocation7 + $0x8] ss:$12 sps:$4 sm:$0xff]   ;;  %v2464_v47 = vld [vmem:[#allocation2] ss:$0 sm:$0xff]  ;;  %v2465_v51 = vld [vmem:[#allocation5] ss:$0 sm:$0xff] }
  0xd9   : > { %744 = vadd.xlane.f32.xlu0 %v739_v1  ;;  %2690 = vmatprep.subr.bf16.mxu1 %v3547_v4  ;;  %s2460_s3 = sshll.u32 %s726_s19, 4  ;;  %s4178_s21 = scalar_lea.sflag [#allocation4], %s726_s19 }
  0xda   : > { %s728_s22 = scalar_lea.vmem [#allocation22], %s2460_s3  ;;  %p4294_p5 = scmp.ne.s32.totalorder %s4258_s2, 0 }
  0xdb   : > { %956 = vmatpush1.bf16.msra.mxu0 %v3045_v24  ;;  %s2253_s30 = sshll.u32 %s728_s22, 4  ;;  %s3550_s25 = smov [#allocation22]   ;;  %s4170_s30 = int_to_ptr.vmem [resolvable:$true] %s2253_s30 }
  0xdc   : > { %2691 = vmatpush3.bf16.msra.mxu1 %v3046_v25  ;;  %957 = vmatprep.subr.bf16.mxu0 %v3047_v26  ;;  %s3441_s0 = scalar_lea.vmem %s4170_s30, 256  ;;  %s3445_s23 = sshll.u32 %s3550_s25, 4  ;;  %s3446_s23 = int_to_ptr.vmem [resolvable:$false] %s3445_s23 }
  0xdd   : > { %2692 = vmatprep.subr.bf16.mxu1 %v3547_v4  ;;  %p3442_p11 = scmp.ne.s32.totalorder %s4170_s30, %s3441_s0  ;;  %s3447_s29 = scalar_lea.vmem %s3446_s23, 512 }
  0xde   : > { %p3448_p12 = scmp.lt.s32.totalorder %s4170_s30, %s3446_s23  ;;  %p3449_p0 = scmp.lt.s32.totalorder %s3447_s29, %s3441_s0 }
  0xdf   : > { %958 = vmatpush1.bf16.msra.mxu0 %v3049_v27  ;;  %p3443_p6 = pnand %p3442_p11, %p4294_p5 }
  0xe0   : > { %2693 = vmatpush3.bf16.msra.mxu1 %v3050_v28  ;;  %959 = vmatprep.subr.bf16.mxu0 %v3051_v29  ;;  %p3450_p1 = por %p3449_p0, %p3448_p12 }
  0xe1   : > { %2694 = vmatprep.subr.bf16.mxu1 %v3547_v4  ;;  %p3444_p10 = pneg %p3443_p6 }
  0xe3   : > { %960 = vmatpush1.bf16.msra.mxu0 %v3053_v31  ;;  %p3451_p3 = pnand %p3450_p1, %p3444_p10 }
  0xe4   : > { %2695 = vmatpush3.bf16.msra.mxu1 %v3054_v32  ;;  %961 = vmatprep.subr.bf16.mxu0 %v3055_v33 }
  0xe5   : > { %2696 = vmatprep.subr.bf16.mxu1 %v3547_v4 }
  0xe7   : > { %962 = vmatpush1.bf16.msra.mxu0 %v3057_v34 }
  0xe8   : > { %2697 = vmatpush3.bf16.msra.mxu1 %v3058_v35  ;;  %963 = vmatprep.subr.bf16.mxu0 %v3059_v36 }
  0xe9   : > { %2698 = vmatprep.subr.bf16.mxu1 %v3547_v4 }
  0xeb   : > { %964 = vmatpush1.bf16.msra.mxu0 %v3061_v37 }
  0xec   : > { %2699 = vmatpush3.bf16.msra.mxu1 %v3062_v38 }
 0x15e   : > { %v743_v6 = vpop.xlane.xlu0 %742 }
 0x15f   : > { %v746_v7 = vmul.f32 0.03125, %v743_v6 }
 0x161   : > { %v748_v9 = vsub.f32 %v738_v0, %v746_v7 }
 0x162   : > { %v745_v10 = vpop.xlane.xlu0 %744 }
 0x163   : > { %v747_v11 = vmul.f32 0.03125, %v745_v10  ;;  %v3861_v12 = vmul.f32 %v3858_v8, %v748_v9 }
 0x165   : > { %v749_v13 = vsub.f32 %v739_v1, %v747_v11  ;;  %v758_v14 = vmul.f32 %v3861_v12, %v3861_v12 }
 0x167   : > { %760 = vadd.xlane.f32.xlu1 %v758_v14  ;;  %v3866_v15 = vmul.f32 %v3858_v8, %v749_v13 }
 0x169   : > { %v759_v16 = vmul.f32 %v3866_v15, %v3866_v15 }
 0x16b   : > { %762 = vadd.xlane.f32.xlu1 %v759_v16 }
 0x1f0   : > { %v761_v39 = vpop.xlane.xlu1 %760 }
 0x1f1   : > { %v764_v40 = vmul.f32 0.03125, %v761_v39 }
 0x1f3   : > { %v766_v41 = vadd.f32 1e-05, %v764_v40 }
 0x1f4   : > { %v763_v42 = vpop.xlane.xlu1 %762 }
 0x1f5   : > { %3103 = vrsqrt.f32 %v766_v41  ;;  %v765_v43 = vmul.f32 0.03125, %v763_v42 }
 0x1f7   : > { %v767_v44 = vadd.f32 1e-05, %v765_v43 }
 0x1f9   : > { %3105 = vrsqrt.f32 %v767_v44 }
 0x202   : > { %v3104_v45 = vpop.eup %3103 }
 0x203   : > { %v770_v46 = vmul.f32 %v3104_v45, %v3861_v12 }
 0x205   : > { %v778_v50 = vmul.f32 %v2464_v47, %v770_v46 }
 0x206   : > { %v3106_v48 = vpop.eup %3105 }
 0x207   : > { %v771_v49 = vmul.f32 %v3106_v48, %v3866_v15  ;;  %v786_v53 = vadd.f32 %v2465_v51, %v778_v50 }
 0x209   : > { %v779_v52 = vmul.f32 %v2464_v47, %v771_v49 }
 0x20b   : > { %v787_v54 = vadd.f32 %v2465_v51, %v779_v52 }
 0x20d   : > { %v788_v55 = vpack.c.bf16 %v787_v54, %v786_v53 }
 0x20f   : > { %982 = vmatmul.mubr.bf16.vlgmr.msra.gmra.mxu0 %v788_v55  ;;  %2701 = vmatmul.mubr.bf16.vlgmr.msra.gmra.mxu1 %v788_v55 }
 0x2cf   : > { %v983_v56 = vpop.f32.mrf.mxu0  ;;  %v1026_v57 = vpop.f32.mrf.mxu1 }
 0x2d0   : > { %v2558_v58 = vpack.c.bf16 %v1026_v57, %v1026_v57 }
 0x2d1   : > { %v985_v59 = vpop.f32.mrf.mxu0  ;;  %v2702_v60 = vpop.f32.mrf.mxu1 }
 0x2d2   : > { %v1100_v61 = vsel %vm1098_vm1, %v2558_v58, 0  ;;  %2860 = vmatprep.subr.msk.bf16.mxu0 %vm1098_vm1, %v2558_v58 }
 0x2d3   : > { %v987_v62 = vpop.f32.mrf.mxu0  ;;  %v1029_v63 = vpop.f32.mrf.mxu1  ;;  %2705 = vmatpush3.bf16.msra.mxu0 %v1100_v61 }
 0x2d4   : > { %v1033_v0 = vpack.c.bf16 %v987_v62, %v983_v56  ;;  %v2559_v1 = vpack.c.bf16 %v1029_v63, %v1029_v63  ;;  %2740 = vmatprep.subr.bf16.mxu0 %v3547_v4 }
 0x2d5   : > { %v989_v2 = vpop.f32.mrf.mxu0  ;;  %v2703_v3 = vpop.f32.mrf.mxu1 }
 0x2d6   : > { %v1240_v5 = vsel %vm1098_vm1, %v2559_v1, 0  ;;  %v1034_v6 = vpack.c.bf16 %v989_v2, %v985_v59  ;;  %2861 = vmatprep.subr.msk.bf16.mxu1 %vm1098_vm1, %v2559_v1  ;;  %v1036_v15 = vmax.bf16 %v3548_v30, %v1033_v0 }
 0x2d7   : > { %2723 = vmatpush3.bf16.msra.mxu1 %v1240_v5 }
 0x2d8   : > { %v1037_v7 = vmax.bf16 %v3548_v30, %v1034_v6  ;;  %2760 = vmatprep.subr.bf16.mxu1 %v3547_v4  ;;  %v3889_v20 = vcombine.low %v1036_v15, %v1036_v15  ;;  %v3891_v21 = vcombine.high %v1036_v15, %v1036_v15 }
 0x2da   : > { %v2493_v9 = vcombine.high %v1037_v7, %v1037_v7  ;;  %v2492_v10 = vcombine.low %v1037_v7, %v1037_v7  ;;  %v1514_v26 = vunpack.c.l.bf16 %v3891_v21  ;;  %v1513_v28 = vunpack.c.l.bf16 %v3889_v20 }
 0x2dc   : > { %1199 = vxpose.xlu1.c.b16.start.end [1/1] (short) %v2493_v9, 128  ;;  %v1500_v11 = vunpack.c.l.bf16 %v2493_v9  ;;  %1057 = vxpose.xlu0.c.b16.start.end [1/1] (short) %v2492_v10, 128  ;;  %v1499_v12 = vunpack.c.l.bf16 %v2492_v10 }
 0x2de   : > { %v1507_v13 = vrot.slane %v1500_v11, 4  ;;  %v1501_v14 = vrot.slane %v1499_v12, 4 }
 0x2e0   : > { %v1508_v16 = vadd.f32 %v1507_v13, %v1500_v11  ;;  %v1502_v17 = vadd.f32 %v1501_v14, %v1499_v12  ;;  %v2599_v11 = vld [vmem:[#allocation8 + $0x38] sm:$0xff]   ;;  %v2598_v14 = vld [vmem:[#allocation8 + $0x30] sm:$0xff]  }
 0x2e1   : > { %v2591_v15 = vunpack.c.l.bf16 %v2599_v11 }
 0x2e2   : > { %v1509_v18 = vrot.slane %v1508_v16, 2  ;;  %v1503_v19 = vrot.slane %v1502_v17, 2 }
 0x2e4   : > { %v1510_v22 = vadd.f32 %v1509_v18, %v1508_v16  ;;  %v1504_v23 = vadd.f32 %v1503_v19, %v1502_v17  ;;  %v2592_v16 = vunpack.c.h.bf16 %v2599_v11  ;;  %v2597_v19 = vld [vmem:[#allocation8 + $0x28] sm:$0xff]  }
 0x2e6   : > { %v1511_v24 = vrot.slane %v1510_v22, 1  ;;  %v1505_v25 = vrot.slane %v1504_v23, 1 }
 0x2e8   : > { %v1506_v27 = vadd.f32 %v1505_v25, %v1504_v23  ;;  %v1512_v29 = vadd.f32 %v1511_v24, %v1510_v22  ;;  %v2587_v23 = vunpack.c.l.bf16 %v2598_v14  ;;  %v2588_v24 = vunpack.c.h.bf16 %v2598_v14 }
 0x2ea   : > { %v3895_v31 = vmul.f32 %v1513_v28, %v1506_v27  ;;  %v3897_v32 = vmul.f32 %v1514_v26, %v1512_v29 }
 0x33e   : > { %v1207_v33 = vpop.trf.xlu1  ;;  %v1065_v34 = vpop.trf.xlu0 }
 0x33f   : > { %2706 = vmatprep.mubr.msk.bf16.mxu0 %vm1073_vm2, %v1065_v34  ;;  %2724 = vmatprep.mubr.msk.bf16.mxu1 %vm1073_vm2, %v1207_v33  ;;  %v2583_v34 = vunpack.c.l.bf16 %v2597_v19 }
 0x342   : > { %v1208_v35 = vpop.trf.xlu1  ;;  %v1066_v36 = vpop.trf.xlu0 }
 0x343   : > { %2707 = vmatmul.mubr.msk.bf16.vlgmr.msra.gmra.mxu0 %vm1073_vm2, %v1066_v36  ;;  %2725 = vmatmul.mubr.msk.bf16.vlgmr.msra.gmra.mxu1 %vm1073_vm2, %v1208_v35  ;;  %v2584_v35 = vunpack.c.h.bf16 %v2597_v19 }
 0x346   : > { %v1209_v37 = vpop.trf.xlu1  ;;  %v1067_v38 = vpop.trf.xlu0 }
 0x347   : > { %2710 = vmatprep.mubr.msk.bf16.mxu0 %vm1073_vm2, %v1067_v38  ;;  %2728 = vmatprep.mubr.msk.bf16.mxu1 %vm1073_vm2, %v1209_v37 }
 0x34a   : > { %v1210_v39 = vpop.trf.xlu1  ;;  %v1068_v40 = vpop.trf.xlu0 }
 0x34b   : > { %2711 = vmatmul.mubr.msk.bf16.gmra.mxu0 %vm1073_vm2, %v1068_v40  ;;  %2729 = vmatmul.mubr.msk.bf16.gmra.mxu1 %vm1073_vm2, %v1210_v39 }
 0x34e   : > { %v1211_v41 = vpop.trf.xlu1  ;;  %v1069_v42 = vpop.trf.xlu0 }
 0x34f   : > { %2714 = vmatprep.mubr.msk.bf16.mxu0 %vm1073_vm2, %v1069_v42  ;;  %2732 = vmatprep.mubr.msk.bf16.mxu1 %vm1073_vm2, %v1211_v41 }
 0x352   : > { %v1212_v43 = vpop.trf.xlu1  ;;  %v1070_v44 = vpop.trf.xlu0 }
 0x353   : > { %2715 = vmatmul.mubr.msk.bf16.gmra.mxu0 %vm1073_vm2, %v1070_v44  ;;  %2733 = vmatmul.mubr.msk.bf16.gmra.mxu1 %vm1073_vm2, %v1212_v43  ;;  %v2596_v43 = vld [vmem:[#allocation8 + $0x20] sm:$0xff]  }
 0x356   : > { %v1213_v45 = vpop.trf.xlu1  ;;  %v1071_v46 = vpop.trf.xlu0 }
 0x357   : > { %2718 = vmatprep.mubr.msk.bf16.mxu0 %vm1073_vm2, %v1071_v46  ;;  %2736 = vmatprep.mubr.msk.bf16.mxu1 %vm1073_vm2, %v1213_v45 }
 0x35a   : > { %v1214_v47 = vpop.trf.xlu1  ;;  %v1072_v48 = vpop.trf.xlu0 }
 0x35b   : > { %2719 = vmatmul.mubr.msk.bf16.gmra.mxu0 %vm1073_vm2, %v1072_v48  ;;  %2737 = vmatmul.mubr.msk.bf16.gmra.mxu1 %vm1073_vm2, %v1214_v47  ;;  %v2595_v47 = vld [vmem:[#allocation8 + $0x18] sm:$0xff]   ;;  %v2579_v48 = vunpack.c.l.bf16 %v2596_v43 }
 0x35c   : > { %2756 = vmatprep.mubr.msk.bf16.mxu0 %vm3549_vm0, %v3547_v4  ;;  %2776 = vmatprep.mubr.msk.bf16.mxu1 %vm3549_vm0, %v3547_v4 }
 0x403   : > { %v3919_v49 = vpop.f32.mrf.mxu0  ;;  %v3921_v50 = vpop.f32.mrf.mxu1 }
 0x405   : > { %v3923_v51 = vpop.f32.mrf.mxu0  ;;  %v3925_v52 = vpop.f32.mrf.mxu1 }
 0x407   : > { %v3927_v53 = vpop.f32.mrf.mxu0  ;;  %v3929_v54 = vpop.f32.mrf.mxu1 }
 0x409   : > { %v3931_v55 = vpop.f32.mrf.mxu0  ;;  %v3933_v56 = vpop.f32.mrf.mxu1 }
 0x40b   : > { %v3935_v57 = vpop.f32.mrf.mxu0  ;;  %v3937_v58 = vpop.f32.mrf.mxu1 }
 0x40d   : > { %v3939_v59 = vpop.f32.mrf.mxu0  ;;  %v3941_v60 = vpop.f32.mrf.mxu1 }
 0x40f   : > { %v3943_v61 = vpop.f32.mrf.mxu0  ;;  %v3945_v62 = vpop.f32.mrf.mxu1 }
 0x411   : > { %v3947_v63 = vpop.f32.mrf.mxu0  ;;  %v3949_v0 = vpop.f32.mrf.mxu1 }
 0x413   : > { %v2716_v1 = vpop.f32.mrf.mxu0  ;;  %v2734_v2 = vpop.f32.mrf.mxu1 }
 0x414   : > { %v1397_v42 = vmul.f32 %v2734_v2, %v2583_v34  ;;  %v1381_v14 = vmul.f32 %v2716_v1, %v2583_v34  ;;  %v2575_v2 = vunpack.c.l.bf16 %v2595_v47 }
 0x415   : > { %v1168_v3 = vpop.f32.mrf.mxu0  ;;  %v1308_v5 = vpop.f32.mrf.mxu1 }
 0x417   : > { %v2717_v6 = vpop.f32.mrf.mxu0  ;;  %v2735_v7 = vpop.f32.mrf.mxu1 }
 0x418   : > { %v1398_v44 = vmul.f32 %v2735_v7, %v2584_v35  ;;  %v1382_v11 = vmul.f32 %v2717_v6, %v2584_v35  ;;  %v2576_v7 = vunpack.c.h.bf16 %v2595_v47  ;;  %v2562_v35 = vld [vmem:[#allocation8] sm:$0xff]  }
 0x419   : > { %v1171_v9 = vpop.f32.mrf.mxu0  ;;  %v1311_v10 = vpop.f32.mrf.mxu1  ;;  %v1521_v47 = vld [vmem:[%s4224_s6 + $0x20] sm:$0xff] }
 0x41a   : > { %v1394_v6 = vmul.f32 %v3945_v62, %v2576_v7 }
 0x41b   : > { %v2720_v12 = vpop.f32.mrf.mxu0  ;;  %v2738_v13 = vpop.f32.mrf.mxu1 }
 0x41c   : > { %v1401_v22 = vmul.f32 %v2738_v13, %v2591_v15  ;;  %v1385_v27 = vmul.f32 %v2720_v12, %v2591_v15  ;;  %v2580_v12 = vunpack.c.h.bf16 %v2596_v43  ;;  %v1395_v15 = vmul.f32 %v2579_v48, %v1308_v5  ;;  %v2593_v5 = vld [vmem:[#allocation8 + $0x8] sm:$0xff]   ;;  %v1525_v43 = vld [vmem:[%s4224_s6 + $0x40] sm:$0xff] }
 0x41d   : > { %v1184_v17 = vpop.f32.mrf.mxu0  ;;  %v1324_v18 = vpop.f32.mrf.mxu1 }
 0x41e   : > { %v1399_v28 = vmul.f32 %v2587_v23, %v1324_v18  ;;  %v1383_v45 = vmul.f32 %v2587_v23, %v1184_v17  ;;  %v1396_v18 = vmul.f32 %v2580_v12, %v1311_v10  ;;  %v1408_v17 = vpack.c.bf16 %v1382_v11, %v1381_v14  ;;  %v2594_v23 = vld [vmem:[#allocation8 + $0x10] sm:$0xff]   ;;  %v1608_v14 = vld [vmem:[#allocation10] sm:$0xff] }
 0x41f   : > { %v2721_v25 = vpop.f32.mrf.mxu0  ;;  %v2739_v26 = vpop.f32.mrf.mxu1  ;;  %v1380_v19 = vmul.f32 %v2580_v12, %v1171_v9  ;;  %v2571_v10 = vunpack.c.l.bf16 %v2594_v23  ;;  %v1377_v9 = vmul.f32 %v3935_v57, %v2575_v2  ;;  %v1519_v11 = vld [vmem:[%s4224_s6 + $0x10] sm:$0xff]  ;;  %v1518_v12 = vld [vmem:[%s4224_s6 + $0x8] sm:$0xff] }
 0x420   : > { %v1386_v29 = vmul.f32 %v2721_v25, %v2592_v16  ;;  %v1402_v33 = vmul.f32 %v2739_v26, %v2592_v16  ;;  %v1416_v16 = vpack.c.bf16 %v1398_v44, %v1397_v42  ;;  %v1415_v1 = vpack.c.bf16 %v1396_v18, %v1395_v15  ;;  %v1524_v44 = vld [vmem:[%s4224_s6 + $0x38] sm:$0xff]  ;;  %v3063_v15 = vld [vmem:[#allocation11 + $0x38] sm:$0xff]  }
 0x421   : > { %v1187_v36 = vpop.f32.mrf.mxu0  ;;  %v1327_v37 = vpop.f32.mrf.mxu1  ;;  %v1378_v25 = vmul.f32 %v3943_v61, %v2576_v7  ;;  %v2572_v26 = vunpack.c.h.bf16 %v2594_v23 }
 0x422   : > { %v1410_v38 = vpack.c.bf16 %v1386_v29, %v1385_v27  ;;  %v1418_v39 = vpack.c.bf16 %v1402_v33, %v1401_v22  ;;  %v1384_v40 = vmul.f32 %v2588_v24, %v1187_v36  ;;  %v1400_v41 = vmul.f32 %v2588_v24, %v1327_v37 }
 0x423   : > { %v1393_v22 = vmul.f32 %v3937_v58, %v2575_v2  ;;  %v1379_v24 = vmul.f32 %v2579_v48, %v1168_v3  ;;  %v1391_v58 = vmul.f32 %v2571_v10, %v3941_v60  ;;  %v1392_v62 = vmul.f32 %v2572_v26, %v3949_v0  ;;  %v1520_v48 = vld [vmem:[%s4224_s6 + $0x18] sm:$0xff] }
 0x424   : > { %v1417_v46 = vpack.c.bf16 %v1400_v41, %v1399_v28  ;;  %2741 = vmatpush3.bf16.msra.mxu0 %v1410_v38  ;;  %2761 = vmatpush3.bf16.msra.mxu1 %v1418_v39  ;;  %v1409_v13 = vpack.c.bf16 %v1384_v40, %v1383_v45  ;;  %v2567_v3 = vunpack.c.l.bf16 %v2593_v5  ;;  %v2568_v29 = vunpack.c.h.bf16 %v2593_v5  ;;  %v1523_v45 = vld [vmem:[%s4224_s6 + $0x30] sm:$0xff] }
 0x425   : > { %2742 = vmatprep.subr.bf16.mxu0 %v3547_v4  ;;  %2762 = vmatprep.subr.bf16.mxu1 %v3547_v4  ;;  %v1407_v27 = vpack.c.bf16 %v1380_v19, %v1379_v24  ;;  %v1414_v28 = vpack.c.bf16 %v1394_v6, %v1393_v22  ;;  %v1406_v33 = vpack.c.bf16 %v1378_v25, %v1377_v9  ;;  %v2563_v0 = vunpack.c.l.bf16 %v2562_v35  ;;  %v3066_v5 = vld [vmem:[#allocation11 + $0x20] sm:$0xff]   ;;  %v3068_v25 = vld [vmem:[#allocation11 + $0x10] sm:$0xff]  }
 0x426   : > { %v1376_v61 = vmul.f32 %v2572_v26, %v3947_v63  ;;  %v1389_v34 = vmul.f32 %v3921_v50, %v2567_v3  ;;  %v1390_v57 = vmul.f32 %v3929_v54, %v2568_v29  ;;  %v1375_v60 = vmul.f32 %v2571_v10, %v3939_v59  ;;  %v3067_v10 = vld [vmem:[#allocation11 + $0x18] sm:$0xff]   ;;  %v3069_v26 = vld [vmem:[#allocation11 + $0x8] sm:$0xff]  }
 0x427   : > { %v1413_v36 = vpack.c.bf16 %v1392_v62, %v1391_v58  ;;  %v1374_v37 = vmul.f32 %v3927_v53, %v2568_v29  ;;  %v2564_v38 = vunpack.c.h.bf16 %v2562_v35  ;;  %v1373_v63 = vmul.f32 %v3919_v49, %v2567_v3  ;;  %v2514_v35 = vld [vmem:[#allocation13] ss:$0 sm:$0xff] }
 0x428   : > { %2743 = vmatpush3.bf16.msra.mxu0 %v1409_v13  ;;  %2763 = vmatpush3.bf16.msra.mxu1 %v1417_v46  ;;  %v1405_v39 = vpack.c.bf16 %v1376_v61, %v1375_v60  ;;  %v1387_v50 = vmul.f32 %v2563_v0, %v3925_v52  ;;  %v1412_v40 = vpack.c.bf16 %v1390_v57, %v1389_v34  ;;  %v1532_v52 = vld [vmem:[%s4224_s6 + $0x78] sm:$0xff]  ;;  %v1522_v46 = vld [vmem:[%s4224_s6 + $0x28] sm:$0xff]  ;;  %v1517_v13 = vld [vmem:[%s4224_s6] sm:$0xff]  ;;  %v1810_v34 = vlaneseq }
 0x429   : > { %2744 = vmatprep.subr.bf16.mxu0 %v3547_v4  ;;  %2764 = vmatprep.subr.bf16.mxu1 %v3547_v4  ;;  %v1388_v54 = vmul.f32 %v2564_v38, %v3933_v56  ;;  %v1404_v59 = vpack.c.bf16 %v1374_v37, %v1373_v63  ;;  %v1372_v41 = vmul.f32 %v2564_v38, %v3931_v55  ;;  %v1530_v55 = vld [vmem:[%s4224_s6 + $0x68] sm:$0xff]  ;;  %v1529_v56 = vld [vmem:[%s4224_s6 + $0x60] sm:$0xff] }
 0x42a   : > { %v1371_v53 = vmul.f32 %v2563_v0, %v3923_v51  ;;  %v1531_v51 = vld [vmem:[%s4224_s6 + $0x70] sm:$0xff]  ;;  %v4049_v57 = vshrl.u32 %v1810_v34, 7 }
 0x42b   : > { %v1411_v42 = vpack.c.bf16 %v1388_v54, %v1387_v50 }
 0x42c   : > { %2745 = vmatpush3.bf16.msra.mxu0 %v1408_v17  ;;  %2765 = vmatpush3.bf16.msra.mxu1 %v1416_v16  ;;  %v1403_v49 = vpack.c.bf16 %v1372_v41, %v1371_v53  ;;  %v3064_v16 = vld [vmem:[#allocation11 + $0x30] sm:$0xff]   ;;  %v1871_v38 = vsub.s32 1, %v4049_v57  ;;  %v1817_v63 = vand.u32 7, %v4049_v57  ;;  %vm1841_vm4 = vcmp.lt.s32.totalorder %v4049_v57, 1 }
 0x42d   : > { %2746 = vmatprep.subr.bf16.mxu0 %v3547_v4  ;;  %2766 = vmatprep.subr.bf16.mxu1 %v3547_v4  ;;  %vm1854_vm5 = vcmp.lt.s32.totalorder %v4049_v57, 7 }
 0x42e   : > { %vm4064_vm3 = vcmp.eq.s32.totalorder %v1817_v63, 0  ;;  %vm4070_vm6 = vcmp.eq.s32.totalorder %v1817_v63, 7  ;;  %v3077_v63 = vld [vmem:[%s4232_s14 + $0x50] ss:$8 sps:$4 sm:$0xff]  }
 0x430   : > { %2747 = vmatpush3.bf16.msra.mxu0 %v1407_v27  ;;  %2767 = vmatpush3.bf16.msra.mxu1 %v1415_v1  ;;  %v3065_v1 = vld [vmem:[#allocation11 + $0x28] sm:$0xff]   ;;  %v3070_v27 = vld [vmem:[#allocation11] sm:$0xff]  }
 0x431   : > { %2748 = vmatprep.subr.bf16.mxu0 %v3547_v4  ;;  %2768 = vmatprep.subr.bf16.mxu1 %v3547_v4 }
 0x434   : > { %2749 = vmatpush3.bf16.msra.mxu0 %v1406_v33  ;;  %2769 = vmatpush3.bf16.msra.mxu1 %v1414_v28 }
 0x435   : > { %2750 = vmatprep.subr.bf16.mxu0 %v3547_v4  ;;  %2770 = vmatprep.subr.bf16.mxu1 %v3547_v4 }
 0x438   : > { %2751 = vmatpush3.bf16.msra.mxu0 %v1405_v39  ;;  %2771 = vmatpush3.bf16.msra.mxu1 %v1413_v36  ;;  %v1812_v36 = vadd.s32 8, %v4049_v57  ;;  %v1809_v39 = vld [vmem:[#allocation14] sm:$0x7] }
 0x439   : > { %2752 = vmatprep.subr.bf16.mxu0 %v3547_v4  ;;  %2772 = vmatprep.subr.bf16.mxu1 %v3547_v4 }
 0x43a   : > { %v1824_v54 = vand.u32 7, %v1812_v36 }
 0x43c   : > { %2753 = vmatpush3.bf16.msra.mxu0 %v1404_v59  ;;  %2773 = vmatpush3.bf16.msra.mxu1 %v1412_v40  ;;  %v1865_v40 = vsub.s32 0, %v4049_v57  ;;  %v3127_v59 = vld [vmem:[%s3849_s26] sm:$0xff]  ;;  %vm4076_vm7 = vcmp.eq.s32.totalorder %v1824_v54, 0  ;;  %vm4080_vm8 = vcmp.eq.s32.totalorder %v1824_v54, 7  ;;  %v3085_v54 = vld [vmem:[%s4232_s14 + $0x34] ss:$8 sps:$4 sm:$0xff]  }
 0x43d   : > { %2754 = vmatprep.subr.bf16.mxu0 %v3547_v4  ;;  %2774 = vmatprep.subr.bf16.mxu1 %v3547_v4 }
 0x440   : > { %2755 = vmatpush3.bf16.msra.mxu0 %v1403_v49  ;;  %2775 = vmatpush3.bf16.msra.mxu1 %v1411_v42  ;;  %v1872_v49 = vrot.slane %v1809_v39, %v1871_v38 }
 0x441   : > { %2780 = vmatprep.subr.mxu0 %v1532_v52  ;;  %2820 = vmatprep.subr.bf16.mxu1 %v3547_v4 }
 0x443   : > { %2757 = vmatmul.mubr.bf16.vlgmr.msra.gmra.mxu0 %v3889_v20  ;;  %2777 = vmatmul.mubr.bf16.vlgmr.msra.gmra.mxu1 %v3891_v21  ;;  %v1528_v20 = vld [vmem:[%s4224_s6 + $0x58] sm:$0xff]  ;;  %v1527_v21 = vld [vmem:[%s4224_s6 + $0x50] sm:$0xff] }
 0x444   : > { %2781 = vmatpush3.msra.mxu0 %v1532_v52  ;;  %2812 = vmatprep.mubr.f32.mxu0 %v3895_v31  ;;  %v1526_v31 = vld [vmem:[%s4224_s6 + $0x48] sm:$0xff]  ;;  %v1879_v52 = vsub.s32 2, %v4049_v57 }
 0x445   : > { %2782 = vmatprep.subr.mxu0 %v1531_v51  ;;  %2836 = vmatprep.mubr.msk.bf16.mxu1 %vm3549_vm0, %v3547_v4 }
 0x446   : > { %2783 = vmatpush3.msra.mxu0 %v1531_v51  ;;  %2821 = vmatpush3.bf16.msra.mxu1 %v3063_v15  ;;  %v3128_v51 = vld [vmem:[%s3849_s26 + $0x8] sm:$0xff] }
 0x447   : > { %2784 = vmatprep.subr.mxu0 %v1530_v55  ;;  %2822 = vmatprep.subr.bf16.mxu1 %v3547_v4 }
 0x448   : > { %2785 = vmatpush3.msra.mxu0 %v1530_v55 }
 0x449   : > { %2786 = vmatprep.subr.mxu0 %v1529_v56 }
 0x44a   : > { %2787 = vmatpush3.msra.mxu0 %v1529_v56  ;;  %2823 = vmatpush3.bf16.msra.mxu1 %v3064_v16  ;;  %v3092_v56 = vld [vmem:[%s4232_s14] ss:$8 sps:$4 sm:$0xff]  }
 0x44b   : > { %2788 = vmatprep.subr.mxu0 %v1528_v20  ;;  %2824 = vmatprep.subr.bf16.mxu1 %v3547_v4 }
 0x44c   : > { %2789 = vmatpush3.msra.mxu0 %v1528_v20 }
 0x44d   : > { %2790 = vmatprep.subr.mxu0 %v1527_v21 }
 0x44e   : > { %2791 = vmatpush3.msra.mxu0 %v1527_v21  ;;  %2825 = vmatpush3.bf16.msra.mxu1 %v3065_v1  ;;  %v1866_v21 = vrot.slane %v1809_v39, %v1865_v40  ;;  %v2523_v1 = vld [vmem:[#allocation16] ss:$0 sm:$0xff] }
 0x44f   : > { %2792 = vmatprep.subr.mxu0 %v1526_v31  ;;  %2826 = vmatprep.subr.bf16.mxu1 %v3547_v4 }
 0x450   : > { %2793 = vmatpush3.msra.mxu0 %v1526_v31 }
 0x451   : > { %2794 = vmatprep.subr.mxu0 %v1525_v43 }
 0x452   : > { %2795 = vmatpush3.msra.mxu0 %v1525_v43  ;;  %2827 = vmatpush3.bf16.msra.mxu1 %v3066_v5 }
 0x453   : > { %2796 = vmatprep.subr.mxu0 %v1524_v44  ;;  %2828 = vmatprep.subr.bf16.mxu1 %v3547_v4 }
 0x454   : > { %2797 = vmatpush3.msra.mxu0 %v1524_v44 }
 0x455   : > { %2798 = vmatprep.subr.mxu0 %v1523_v45 }
 0x456   : > { %2799 = vmatpush3.msra.mxu0 %v1523_v45  ;;  %2829 = vmatpush3.bf16.msra.mxu1 %v3067_v10 }
 0x457   : > { %2800 = vmatprep.subr.mxu0 %v1522_v46  ;;  %2830 = vmatprep.subr.bf16.mxu1 %v3547_v4 }
 0x458   : > { %2801 = vmatpush3.msra.mxu0 %v1522_v46 }
 0x459   : > { %2802 = vmatprep.subr.mxu0 %v1521_v47 }
 0x45a   : > { %2803 = vmatpush3.msra.mxu0 %v1521_v47  ;;  %2831 = vmatpush3.bf16.msra.mxu1 %v3068_v25 }
 0x45b   : > { %2804 = vmatprep.subr.mxu0 %v1520_v48  ;;  %2832 = vmatprep.subr.bf16.mxu1 %v3547_v4 }
 0x45c   : > { %2805 = vmatpush3.msra.mxu0 %v1520_v48  ;;  %v1880_v48 = vrot.slane %v1809_v39, %v1879_v52  ;;  %v3079_v39 = vld [vmem:[%s4232_s14 + $0x54] ss:$8 sps:$4 sm:$0xff]   ;;  %v3089_v52 = vld [vmem:[%s4232_s14 + $0x10] ss:$8 sps:$4 sm:$0xff]  }
 0x45d   : > { %2806 = vmatprep.subr.mxu0 %v1519_v11 }
 0x45e   : > { %2807 = vmatpush3.msra.mxu0 %v1519_v11  ;;  %2833 = vmatpush3.bf16.msra.mxu1 %v3069_v26 }
 0x45f   : > { %2808 = vmatprep.subr.mxu0 %v1518_v12  ;;  %2834 = vmatprep.subr.bf16.mxu1 %v3547_v4 }
 0x460   : > { %2809 = vmatpush3.msra.mxu0 %v1518_v12 }
 0x461   : > { %2810 = vmatprep.subr.mxu0 %v1517_v13 }
 0x462   : > { %2811 = vmatpush3.msra.mxu0 %v1517_v13  ;;  %2835 = vmatpush3.bf16.msra.mxu1 %v3070_v27 }
 0x463   : > { %2813 = vmatmul.mubr.f32.vlgmr.msra.gmra.mxu0 %v3897_v32  ;;  %2815 = vmatprep.subr.mxu0 %v1608_v14 }
 0x464   : > { %2816 = vmatpush3.msra.mxu0 %v1608_v14  ;;  %2840 = vmatprep.subr.bf16.mxu1 %v3547_v4 }
 0x503   : > { %v1453_v18 = vpop.f32.mrf.mxu0  ;;  %v1493_v2 = vpop.f32.mrf.mxu1 }
 0x505   : > { %v2758_v7 = vpop.f32.mrf.mxu0  ;;  %v2778_v17 = vpop.f32.mrf.mxu1 }
 0x507   : > { %v1456_v19 = vpop.f32.mrf.mxu0  ;;  %v1496_v22 = vpop.f32.mrf.mxu1 }
 0x509   : > { %v2759_v23 = vpop.f32.mrf.mxu0  ;;  %v2779_v6 = vpop.f32.mrf.mxu1 }
 0x523   : > { %v2814_v32 = vpop.f32.mrf.mxu0 }
 0x525   : > { %v1599_v24 = vpop.f32.mrf.mxu0 }
 0x526   : > { %2817 = vmatprep.mubr.msk.f32.mxu0 %vm1073_vm2, %v1599_v24 }
 0x527   : > { %2818 = vmatmul.mubr.msk.f32.vlgmr.msra.gmra.mxu0 %vm1073_vm2, %v2814_v32 }
 0x528   : > { %2079 = vmatprep.mubr.bf16.mxu0 %v3548_v30 }
 0x5e7   : > { %v2819_v30 = vpop.f32.mrf.mxu0 }
 0x5e8   : > { %v1687_v9 = vadd.f32 1e-06, %v2819_v30 }
 0x5e9   : > { %v1681_v58 = vpop.f32.mrf.mxu0 }
 0x5ea   : > { %3107 = vrcp.f32 %v1687_v9  ;;  %v1682_v28 = vadd.f32 1e-06, %v1681_v58  ;;  %v3071_v9 = vld [vmem:[%s4232_s14 + $0x70] ss:$8 sps:$4 sm:$0xff]   ;;  %v3073_v58 = vld [vmem:[%s4232_s14 + $0x74] ss:$8 sps:$4 sm:$0xff]  }
 0x5eb   : > { %2047 = vmatprep.subr.bf16.mxu0 %v3073_v58 }
 0x5ec   : > { %3109 = vrcp.f32 %v1682_v28  ;;  %v3076_v28 = vld [vmem:[%s4232_s14 + $0x64] ss:$8 sps:$4 sm:$0xff]   ;;  %2048 = vmatpush1.bf16.msra.mxu0 %v3071_v9 }
 0x5ed   : > { %2049 = vmatprep.subr.bf16.mxu0 %v3076_v28 }
 0x5f7   : > { %v3108_v62 = vpop.eup %3107 }
 0x5f8   : > { %v1693_v33 = vmul.f32 %v3108_v62, %v1493_v2  ;;  %v3074_v62 = vld [vmem:[%s4232_s14 + $0x60] ss:$8 sps:$4 sm:$0xff]  }
 0x5f9   : > { %v3110_v3 = vpop.eup %3109  ;;  %2050 = vmatpush1.bf16.msra.mxu0 %v3074_v62 }
 0x5fa   : > { %v1692_v29 = vmul.f32 %v3110_v3, %v1453_v18  ;;  %2051 = vmatprep.subr.bf16.mxu0 %v3079_v39 }
 0x5fc   : > { %v1694_v61 = vpack.c.bf16 %v1693_v33, %v1692_v29 }
 0x5fd   : > { %2052 = vmatpush1.bf16.msra.mxu0 %v3077_v63 }
 0x5fe   : > { %2837 = vmatmul.mubr.bf16.vlgmr.msra.gmra.mxu1 %v1694_v61 }
 0x5ff   : > { %2856 = vmatprep.mubr.msk.bf16.mxu1 %vm3549_vm0, %v3547_v4 }
 0x6be   : > { %v1800_v60 = vpop.f32.mrf.mxu1 }
 0x6bf   : > { %v1801_v0 = vadd.f32 %v2514_v35, %v1800_v60 }
 0x6c0   : > { %v2838_v37 = vpop.f32.mrf.mxu1 }
 0x6c1   : > { %v4056_v41 = vadd.f32 %v3127_v59, %v1801_v0  ;;  %v3083_v59 = vld [vmem:[%s4232_s14 + $0x30] ss:$8 sps:$4 sm:$0xff]  }
 0x6c2   : > { %v1803_v50 = vpop.f32.mrf.mxu1 }
 0x6c3   : > { %v1804_v53 = vadd.f32 %v2514_v35, %v1803_v50  ;;  %v1839_v44 = vrot.slane %v4056_v41, 7  ;;  %v1852_v46 = vrot.slane %v4056_v41, 1  ;;  %v1873_v17 = vmul.f32 %v1872_v49, %v4056_v41  ;;  %v3080_v50 = vld [vmem:[%s4232_s14 + $0x40] ss:$8 sps:$4 sm:$0xff]  }
 0x6c4   : > { %v2839_v42 = vpop.f32.mrf.mxu1 }
 0x6c5   : > { %v4062_v55 = vadd.f32 %v3128_v51, %v1804_v53  ;;  %v3088_v53 = vld [vmem:[%s4232_s14 + $0x24] ss:$8 sps:$4 sm:$0xff]   ;;  %v3086_v42 = vld [vmem:[%s4232_s14 + $0x20] ss:$8 sps:$4 sm:$0xff]  }
 0x6c6   : > { %v3094_v51 = vld [vmem:[%s4232_s14 + $0x4] ss:$8 sps:$4 sm:$0xff]  }
 0x6c7   : > { %v1840_v45 = vrot.slane %v4062_v55, 7  ;;  %v1853_v47 = vrot.slane %v4062_v55, 1  ;;  %v1874_v22 = vmul.f32 %v1872_v49, %v4062_v55  ;;  %v3091_v49 = vld [vmem:[%s4232_s14 + $0x14] ss:$8 sps:$4 sm:$0xff]  }
 0x6c9   : > { %v1843_v11 = vsel %vm1841_vm4, %v1840_v45, %v1839_v44  ;;  %v1855_v12 = vsel %vm1854_vm5, %v1852_v46, %v1853_v47  ;;  %v1842_v13 = vsel %vm1841_vm4, %v1839_v44, %v1840_v45  ;;  %v1856_v14 = vsel %vm1854_vm5, %v1853_v47, %v1852_v46  ;;  %v2524_v47 = vld [vmem:[#allocation17] ss:$0 sm:$0xff] }
 0x6ca   : > { %v1848_v15 = vsel %vm4064_vm3, 0.0, %v1843_v11  ;;  %v1861_v16 = vsel %vm4070_vm6, 0.0, %v1855_v12  ;;  %v1849_v18 = vsel %vm4076_vm7, 0.0, %v1842_v13  ;;  %v1862_v2 = vsel %vm4080_vm8, 0.0, %v1856_v14  ;;  %v2525_v12 = vld [vmem:[#allocation19] ss:$0 sm:$0xff] }
 0x6cb   : > { %v1867_v7 = vmul.f32 %v1866_v21, %v1848_v15  ;;  %v1868_v19 = vmul.f32 %v1866_v21, %v1849_v18  ;;  %v1881_v6 = vmul.f32 %v1880_v48, %v1861_v16  ;;  %v1882_v24 = vmul.f32 %v1880_v48, %v1862_v2 }
 0x6cd   : > { %v1875_v23 = vadd.f32 %v1873_v17, %v1867_v7  ;;  %v1876_v32 = vadd.f32 %v1874_v22, %v1868_v19  ;;  %v3095_v7 = vld [vmem:[#allocation20 + $0x38] sm:$0xff]   ;;  %v3096_v17 = vld [vmem:[#allocation20 + $0x30] sm:$0xff]   ;;  %v3097_v19 = vld [vmem:[#allocation20 + $0x28] sm:$0xff]  }
 0x6ce   : > { %2841 = vmatpush3.bf16.msra.mxu1 %v3095_v7  ;;  %v3098_v22 = vld [vmem:[#allocation20 + $0x20] sm:$0xff]  }
 0x6cf   : > { %v1883_v5 = vadd.f32 %v1881_v6, %v1875_v23  ;;  %v1884_v10 = vadd.f32 %v1882_v24, %v1876_v32  ;;  %2842 = vmatprep.subr.bf16.mxu1 %v3547_v4  ;;  %v3099_v23 = vld [vmem:[#allocation20 + $0x18] sm:$0xff]   ;;  %v3100_v6 = vld [vmem:[#allocation20 + $0x10] sm:$0xff]   ;;  %v3101_v32 = vld [vmem:[#allocation20 + $0x8] sm:$0xff]  }
 0x6d0   : > { %v3102_v24 = vld [vmem:[#allocation20] sm:$0xff]  }
 0x6d1   : > { %v1892_v25 = vadd.f32 %v2523_v1, %v1883_v5  ;;  %v1893_v26 = vadd.f32 %v2523_v1, %v1884_v10  ;;  %v1955_v1 = vld [vmem:[%s4233_s15] sm:$0x3] }
 0x6d2   : > { %2843 = vmatpush3.bf16.msra.mxu1 %v3096_v17  ;;  %v1960_v5 = vrot.slane %v1955_v1, %v1865_v40  ;;  %v1964_v10 = vrot.slane %v1955_v1, %v1871_v38 }
 0x6d3   : > { %v1894_v27 = vadd.f32 %v1892_v25, %v4056_v41  ;;  %v1895_v30 = vadd.f32 %v1893_v26, %v4062_v55  ;;  %2844 = vmatprep.subr.bf16.mxu1 %v3547_v4 }
 0x6d5   : > { %1898 = vadd.xlane.f32.xlu0 %v1894_v27  ;;  %1900 = vadd.xlane.f32.xlu1 %v1895_v30 }
 0x6d6   : > { %2845 = vmatpush3.bf16.msra.mxu1 %v3097_v19 }
 0x6d7   : > { %2846 = vmatprep.subr.bf16.mxu1 %v3547_v4 }
 0x6da   : > { %2847 = vmatpush3.bf16.msra.mxu1 %v3098_v22 }
 0x6db   : > { %2848 = vmatprep.subr.bf16.mxu1 %v3547_v4 }
 0x6de   : > { %2849 = vmatpush3.bf16.msra.mxu1 %v3099_v23 }
 0x6df   : > { %2850 = vmatprep.subr.bf16.mxu1 %v3547_v4 }
 0x6e2   : > { %2851 = vmatpush3.bf16.msra.mxu1 %v3100_v6 }
 0x6e3   : > { %2852 = vmatprep.subr.bf16.mxu1 %v3547_v4 }
 0x6e6   : > { %2853 = vmatpush3.bf16.msra.mxu1 %v3101_v32 }
 0x6e7   : > { %2854 = vmatprep.subr.bf16.mxu1 %v3547_v4 }
 0x6ea   : > { %2855 = vmatpush3.bf16.msra.mxu1 %v3102_v24 }
 0x75e   : > { %v1899_v3 = vpop.xlane.xlu0 %1898  ;;  %v1901_v29 = vpop.xlane.xlu1 %1900 }
 0x75f   : > { %v1902_v33 = vmul.f32 0.03125, %v1899_v3  ;;  %v1903_v61 = vmul.f32 0.03125, %v1901_v29 }
 0x761   : > { %v1904_v34 = vsub.f32 %v1894_v27, %v1902_v33  ;;  %v1905_v35 = vsub.f32 %v1895_v30, %v1903_v61 }
 0x763   : > { %v1906_v60 = vmul.f32 %v3858_v8, %v1904_v34  ;;  %v1907_v36 = vmul.f32 %v3858_v8, %v1905_v35  ;;  %v3082_v8 = vld [vmem:[%s4232_s14 + $0x44] ss:$8 sps:$4 sm:$0xff]  }
 0x764   : > { %2053 = vmatprep.subr.bf16.mxu0 %v3082_v8 }
 0x765   : > { %v1908_v0 = vmul.f32 %v1906_v60, %v1906_v60  ;;  %v1909_v37 = vmul.f32 %v1907_v36, %v1907_v36  ;;  %2054 = vmatpush1.bf16.msra.mxu0 %v3080_v50 }
 0x766   : > { %2055 = vmatprep.subr.bf16.mxu0 %v3085_v54 }
 0x767   : > { %1910 = vadd.xlane.f32.xlu0 %v1908_v0  ;;  %1912 = vadd.xlane.f32.xlu1 %v1909_v37 }
 0x769   : > { %2056 = vmatpush1.bf16.msra.mxu0 %v3083_v59 }
 0x76a   : > { %2057 = vmatprep.subr.bf16.mxu0 %v3088_v53 }
 0x76d   : > { %2058 = vmatpush1.bf16.msra.mxu0 %v3086_v42 }
 0x76e   : > { %2059 = vmatprep.subr.bf16.mxu0 %v3091_v49 }
 0x771   : > { %2060 = vmatpush1.bf16.msra.mxu0 %v3089_v52 }
 0x772   : > { %2061 = vmatprep.subr.bf16.mxu0 %v3094_v51 }
 0x775   : > { %2062 = vmatpush1.bf16.msra.mxu0 %v3092_v56 }
 0x7f0   : > { %v1911_v20 = vpop.xlane.xlu0 %1910  ;;  %v1913_v21 = vpop.xlane.xlu1 %1912 }
 0x7f1   : > { %v1914_v31 = vmul.f32 0.03125, %v1911_v20  ;;  %v1915_v43 = vmul.f32 0.03125, %v1913_v21 }
 0x7f3   : > { %v1916_v44 = vadd.f32 1e-05, %v1914_v31  ;;  %v1917_v45 = vadd.f32 1e-05, %v1915_v43  ;;  %v2544_v43 = vld [vmem:[%s4235_s17] ss:$0 sm:$0xff] }
 0x7f5   : > { %3111 = vrsqrt.f32 %v1916_v44 }
 0x7f6   : > { %3113 = vrsqrt.f32 %v1917_v45 }
 0x802   : > { %v3112_v46 = vpop.eup %3111 }
 0x803   : > { %v3114_v48 = vpop.eup %3113  ;;  %v1920_v11 = vmul.f32 %v3112_v46, %v1906_v60 }
 0x804   : > { %v1921_v13 = vmul.f32 %v3114_v48, %v1907_v36 }
 0x805   : > { %v1928_v14 = vmul.f32 %v2524_v47, %v1920_v11 }
 0x806   : > { %v1929_v15 = vmul.f32 %v2524_v47, %v1921_v13 }
 0x807   : > { %v1936_v16 = vadd.f32 %v2525_v12, %v1928_v14 }
 0x808   : > { %v1937_v18 = vadd.f32 %v2525_v12, %v1929_v15 }
 0x80a   : > { %v1938_v2 = vpack.c.bf16 %v1937_v18, %v1936_v16 }
 0x80c   : > { %2080 = vmatmul.mubr.bf16.vlgmr.msra.gmra.mxu0 %v1938_v2 }
 0x8cc   : > { %v2081_v25 = vpop.f32.mrf.mxu0 }
 0x8cd   : > { %v2082_v26 = vadd.f32 %v2081_v25, %v1960_v5 }
 0x8ce   : > { %v2083_v27 = vpop.f32.mrf.mxu0 }
 0x8cf   : > { %v2104_v30 = vmul.f32 0.044715, %v2082_v26  ;;  %v2084_v9 = vadd.f32 %v2083_v27, %v1964_v10  ;;  %v2102_v53 = vmul.f32 0.5, %v2082_v26 }
 0x8d0   : > { %v2085_v58 = vpop.f32.mrf.mxu0 }
 0x8d1   : > { %v2106_v28 = vmul.f32 %v2104_v30, %v2082_v26  ;;  %v2542_v62 = vmul.f32 -1.442695, %v2084_v9  ;;  %v2086_v4 = vadd.f32 %v2085_v58, %v1960_v5 }
 0x8d2   : > { %v2087_v3 = vpop.f32.mrf.mxu0 }
 0x8d3   : > { %v2108_v29 = vmul.f32 %v2106_v28, %v2082_v26  ;;  %3115 = vpow2.f32 %v2542_v62  ;;  %v2105_v33 = vmul.f32 0.044715, %v2086_v4  ;;  %v2088_v61 = vadd.f32 %v2087_v3, %v1964_v10 }
 0x8d4   : > { %v2103_v42 = vmul.f32 0.5, %v2086_v4 }
 0x8d5   : > { %v2107_v34 = vmul.f32 %v2105_v33, %v2086_v4  ;;  %v2543_v35 = vmul.f32 -1.442695, %v2088_v61  ;;  %v2110_v40 = vadd.f32 %v2108_v29, %v2082_v26 }
 0x8d7   : > { %v2109_v60 = vmul.f32 %v2107_v34, %v2086_v4  ;;  %3117 = vpow2.f32 %v2543_v35  ;;  %v2112_v38 = vmul.f32 0.7978846, %v2110_v40 }
 0x8d9   : > { %v2111_v57 = vadd.f32 %v2109_v60, %v2086_v4  ;;  %3119 = vtanh.f32 %v2112_v38 }
 0x8db   : > { %v2113_v36 = vmul.f32 0.7978846, %v2111_v57 }
 0x8dd   : > { %3121 = vtanh.f32 %v2113_v36 }
 0x8e0   : > { %v3116_v0 = vpop.eup %3115 }
 0x8e1   : > { %v2096_v37 = vadd.f32 1.0, %v3116_v0 }
 0x8e3   : > { %3123 = vrcp.f32 %v2096_v37 }
 0x8e4   : > { %v3118_v39 = vpop.eup %3117 }
 0x8e5   : > { %v2097_v63 = vadd.f32 1.0, %v3118_v39 }
 0x8e6   : > { %v3120_v50 = vpop.eup %3119 }
 0x8e7   : > { %3125 = vrcp.f32 %v2097_v63  ;;  %v2116_v54 = vadd.f32 1.0, %v3120_v50 }
 0x8e9   : > { %v2118_v52 = vmul.f32 %v2116_v54, %v2102_v53 }
 0x8ea   : > { %v3122_v8 = vpop.eup %3121 }
 0x8eb   : > { %v2117_v59 = vadd.f32 1.0, %v3122_v8 }
 0x8ed   : > { %v2119_v51 = vmul.f32 %v2117_v59, %v2103_v42 }
 0x8f0   : > { %v3124_v49 = vpop.eup %3123 }
 0x8f1   : > { %v2120_v20 = vmul.f32 %v3124_v49, %v2118_v52 }
 0x8f4   : > { %v3126_v56 = vpop.eup %3125 }
 0x8f5   : > { %v2121_v21 = vmul.f32 %v3126_v56, %v2119_v51 }
 0x8f7   : > { %v2122_v31 = vpack.c.bf16 %v2121_v21, %v2120_v20 }
 0x8f9   : > { %2857 = vmatmul.mubr.bf16.vlgmr.msra.gmra.mxu1 %v2122_v31 }
 0x9b9   : > { %v2228_v44 = vpop.f32.mrf.mxu1 }
 0x9ba   : > { %v2229_v45 = vadd.f32 %v2544_v43, %v2228_v44 }
 0x9bb   : > { %v2858_v46 = vpop.f32.mrf.mxu1 }
 0x9bc   : > { %v2235_v47 = vadd.f32 %v2229_v45, %v4056_v41 }
 0x9bd   : > { %v2231_v48 = vpop.f32.mrf.mxu1 }
 0x9be   : > { %2237 = vst [vmem:[%s728_s22] sm:$0xff] %v2235_v47  ;;  %v2232_v11 = vadd.f32 %v2544_v43, %v2231_v48 }
 0x9bf   : > { %v2859_v12 = vpop.f32.mrf.mxu1 }
 0x9c0   : > { %v2236_v13 = vadd.f32 %v2232_v11, %v4062_v55 }
 0x9c2   : > { %2238 = vst [vmem:[%s728_s22 + $0x8] sm:$0xff] %v2236_v13 }
 0x9c3   : > { %3454 = shalt.err (!%p3451_p3)
}
 0x9c4   : > { %s3455_s19 = scalar_lea.hbm %s4175_s24, 256  ;;  %s3459_s3 = scalar_lea.hbm %s4236_s18, 512 }
 0x9c5   : > { %p3456_p2 = scmp.ne.s32.totalorder %s4175_s24, %s3455_s19  ;;  %p3460_p7 = scmp.lt.s32.totalorder %s4175_s24, %s4236_s18 }
 0x9c6   : > { %p3461_p8 = scmp.lt.s32.totalorder %s3459_s3, %s3455_s19 }
 0x9c7   : > { %p3457_p4 = pnand %p3456_p2, %p4294_p5 }
 0x9c8   : > { %p3462_p13 = por %p3461_p8, %p3460_p7 }
 0x9c9   : > { %p3458_p9 = pneg %p3457_p4 }
 0x9cb   : > { %p3463_p11 = pnand %p3462_p13, %p3458_p9 }
 0x9cd   : > { %3466 = shalt.err (!%p3463_p11)
}
 0x9ce   : > { %s3551_s1 = smov 128   ;;  %s3552_s26 = smov 8  }
 0x9cf   : > { %2910 = dma.vmem_to_hbm [thread:$0]  (%p4294_p5), %s4170_s30, 256, %s4175_s24, %s4178_s21, %s3551_s1, %s3551_s1, %s3552_s26  }
 0x9d0 PF: > { %s4295_s0 = sld [smem:[#allocation33_spill]] }
 0x9d1   : > { %s4296_s25 = sld [smem:[#allocation31_spill]] }
 0x9d2   : > { %s4297_s23 = sld [smem:[#allocation36_spill]] }
 0x9d6   : > { %p2977_p6 = scmp.ge.s32.totalorder %s4295_s0, 2 }
 0x9d7   : > { %s2268_s29 = sand.u32 1, %s4296_s25  }
 0x9d8   : > { %p4298_p10 = scmp.ne.s32.totalorder %s4297_s23, 0  ;;  %s2269_s19 = scalar_lea.sflag [#allocation4], %s2268_s29 }
 0x9da   : > { %p2950_p12 = pnand %p2977_p6, %p4298_p10 }
 0x9dc   : > { %p2951_p0 = pneg %p2950_p12 }
 0x9de   : > { %3512 = dma.done.wait (%p2951_p0), %s2269_s19, 256  }
 0x9df   : > { %3514 = vsyncadd (%p2951_p0), %s2269_s19, 4294967040  ;;  %s4299_s30 = sld [smem:[#allocation34_spill]]  ;;  %s4302_s27 = smov %s3521_s28 }
 0x9e0   : > { %s4300_s20 = sld [smem:[#allocation32_spill]] }
 0x9e1   : > { %s4301_s29 = sld [smem:[#allocation35_spill]] }
 0x9e5   : > { %p35_p1 = scmp.ge.s32.totalorder %s4299_s30, 4  }
 0x9e6   : > { %s4303_s28 = smov %s4300_s20 }
 0x9e7   :  { %37 = sbr.rel (!%p35_p1) target bundleno = 16 (0x10), region = 176 }
 0x9ec   :  { %2274 = vsyncpa [#allocation3], 1 }
 0x9ed   :  { %2276 = vsyncpa [#allocation3 + $0x1], 1 }
 0x9ee   :  { %2277 = vsyncpa [#allocation6], 1 }
 0x9ef   :  { %2278 = vsyncpa [#allocation9], 1 }
 0x9f0   :  { %2279 = vsyncpa [#allocation12], 1 }
 0x9f1   :  { %2280 = vsyncpa [#allocation15], 1 }
 0x9f2   :  { %2281 = vsyncpa [#allocation18], 1 }
 0x9f3   :  { %2282 = vsyncpa [#allocation21], 1 }
 0x9f4   :  { %2283 = vsyncpa [#allocation4], 1 }
 0x9f5   :  { %2285 = vsyncpa [#allocation4 + $0x1], 1 }

</bundles_post_ra>
